<compile_context>
chip_gen: v5e
topology: v5e:2x2
jax: 0.10.0
libtpu: 0.0.40
codegen_flags: <defaults>
</compile_context>

<pallas_src>
import functools

import jax
import jax.numpy as jnp
from jax.experimental import pallas as pl
from jax.experimental.pallas import tpu as pltpu


# ----------------------------------------------------------------------------
# Single fused kernel: tiled matmul + bias epilogue.
#   x_ref : (tb, tk)   bf16   NCHW-flattened image rows
#   w_ref : (tk, 128)  bf16   fully-folded weight (conv + patch-embed + mean + fc)
#   b_ref : (1, 128)   f32    fully-folded bias (incl. coordinate channels)
#   o_ref : (tb, 128)  f32
#   acc   : (tb, 128)  f32    VMEM accumulator over the K grid axis
# ----------------------------------------------------------------------------
def _matmul_bias_kernel(x_ref, w_ref, b_ref, o_ref, acc_ref):
    k = pl.program_id(1)

    @pl.when(k == 0)
    def _():
        acc_ref[...] = jnp.zeros_like(acc_ref)

    acc_ref[...] += jnp.dot(x_ref[...], w_ref[...],
                            preferred_element_type=jnp.float32)

    @pl.when(k == pl.num_programs(1) - 1)
    def _():
        o_ref[...] = (acc_ref[...] + b_ref[...]).astype(o_ref.dtype)


def fused_forward_matmul(x_flat, w, b, *, tb, tk):
    b_pad, k_total = x_flat.shape
    nc_pad = w.shape[1]
    assert b_pad % tb == 0 and k_total % tk == 0

    # VMEM budget: double-buffered inputs + accumulator + output (+ slack), capped for v7x.
    vmem_bytes = (2 * (tb * tk * 2 + tk * nc_pad * 2)
                  + 2 * tb * nc_pad * 4 + nc_pad * 4 + (4 << 20))
    vmem_limit = int(min(max(vmem_bytes, 32 << 20), 56 << 20))

    return pl.pallas_call(
        _matmul_bias_kernel,
        out_shape=jax.ShapeDtypeStruct((b_pad, nc_pad), jnp.float32),
        grid_spec=pltpu.PrefetchScalarGridSpec(
            num_scalar_prefetch=0,
            grid=(b_pad // tb, k_total // tk),
            in_specs=[
                pl.BlockSpec((tb, tk), lambda i, k: (i, k)),
                pl.BlockSpec((tk, nc_pad), lambda i, k: (k, 0)),
                pl.BlockSpec((1, nc_pad), lambda i, k: (0, 0)),
            ],
            out_specs=pl.BlockSpec((tb, nc_pad), lambda i, k: (i, 0)),
            scratch_shapes=[pltpu.VMEM((tb, nc_pad), jnp.float32)],
        ),
        compiler_params=pltpu.CompilerParams(
            dimension_semantics=("parallel", "arbitrary"),
            vmem_limit_bytes=vmem_limit,
        ),
    )(x_flat, w, b)


# ----------------------------------------------------------------------------
# Parameters (mirror the PyTorch module's learnable tensors)
# ----------------------------------------------------------------------------
def init_params(
    key,
    *,
    image_channels=2,
    embed_rows_cols_2_channels=True,
    feature_chans=32,
    patch=32,
    m_bins=64,
    n_classes=6,
):
    in_chans = image_channels + (2 if embed_rows_cols_2_channels else 1)
    features_2d_size = m_bins // 32
    flat_chans = feature_chans * features_2d_size

    k1, k2, k3, k4, k5, k6 = jax.random.split(key, 6)

    def u(k, shape, fan_in):
        bound = 1.0 / jnp.sqrt(jnp.float32(fan_in))
        return jax.random.uniform(k, shape, jnp.float32, -bound, bound)

    return {
        # input_to_base: Conv2d(in_chans, 3, kernel_size=1) stored as (Cin, 3)
        "input_to_base_w": u(k1, (in_chans, 3), in_chans),
        "input_to_base_b": u(k2, (1, 3), in_chans),
        # TODO(synk): synthetic stride-32 patch-embed standing in for the timm backbone
        "patch_w": u(k3, (patch * patch * 3, feature_chans), patch * patch * 3),
        "patch_b": u(k4, (1, feature_chans), patch * patch * 3),
        # fc: Linear(flat_chans, n_classes) stored as (flat_chans, n_classes)
        "fc_w": u(k5, (flat_chans, n_classes), flat_chans),
        "fc_b": u(k6, (1, n_classes), flat_chans),
    }


def fold_params(
    params,
    *,
    nrows,
    ncols,
    patch=32,
    embed_rows_cols_2_channels=True,
    nc_pad=128,
):
    """One-time f32 folding of the whole linear chain.

    Produces:
      w : (C_img * H * W, 128) bf16  — combined weight, indexed in NCHW-flat order of x
      b : (1, 128)             f32   — combined bias (conv/patch/fc biases + coord channels)
    """
    with jax.default_matmul_precision("highest"):
        W1 = params["input_to_base_w"]        # (in_chans, 3)
        b1 = params["input_to_base_b"][0]     # (3,)
        patch_w = params["patch_w"]           # (patch*patch*3, cf)
        patch_b = params["patch_b"][0]        # (cf,)
        fc_w = params["fc_w"]                 # (cf*nh, nC)
        fc_b = params["fc_b"]                 # (1, nC)

        in_chans = W1.shape[0]
        cf = patch_w.shape[1]
        nC = fc_w.shape[1]
        nh, nw = nrows // patch, ncols // patch
        n_img = in_chans - (2 if embed_rows_cols_2_channels else 1)
        assert fc_w.shape[0] == cf * nh, "flat_chans must equal cf * nh"

        pw = patch_w.reshape(patch, patch, 3, cf)      # (kh, kw, c3, cf)
        fcw3 = fc_w.reshape(cf, nh, nC)                # (f, h, c)

        # Per-(h, kh, kw) weight on the 3-channel conv output, already averaged over nw.
        Wy = jnp.einsum("abcf,fhn->habcn", pw, fcw3) / nw          # (nh, kh, kw, 3, nC)
        # Pull the 1x1 conv back onto the concatenated-input channels.
        Wcat = jnp.einsum("ic,habcn->ihabn", W1, Wy)               # (in, nh, kh, kw, nC)
        # Lay out as a full-image weight in NCHW-flat order (w-independent -> broadcast).
        Wrow = Wcat.reshape(in_chans, nrows, patch, nC)            # i = h*patch + kh
        W_all = jnp.broadcast_to(
            Wrow[:, :, None, :, :], (in_chans, nrows, nw, patch, nC)
        ).reshape(in_chans, nrows, ncols, nC)                      # j = w*patch + kw

        # Biases pushed through the head.
        bpc = patch_b + jnp.einsum("abcf,c->f", pw, b1)            # (cf,)
        b_total = fc_b[0] + jnp.einsum("fhn,f->n", fcw3, bpc)      # (nC,)

        # Constant coordinate channels folded into the bias (f32, no bf16 quantization).
        cols_img = jnp.broadcast_to(
            (jnp.arange(ncols, dtype=jnp.float32) / ncols)[None, :], (nrows, ncols)
        )
        rows_img = jnp.broadcast_to(
            (jnp.arange(nrows, dtype=jnp.float32) / nrows)[:, None], (nrows, ncols)
        )
        if embed_rows_cols_2_channels:
            coord_imgs = jnp.stack([cols_img, rows_img])           # (2, H, W)
        else:
            coord_imgs = (cols_img * rows_img)[None]               # (1, H, W)
        b_total = b_total + jnp.einsum("khw,khwn->n", coord_imgs, W_all[n_img:])

        # Image-channel weight, padded to 128 output lanes (unmasked stores in kernel).
        W_big = W_all[:n_img].reshape(n_img * nrows * ncols, nC)
        W_pad = jnp.zeros((W_big.shape[0], nc_pad), jnp.float32).at[:, :nC].set(W_big)
        b_pad = jnp.zeros((1, nc_pad), jnp.float32).at[:, :nC].set(b_total[None, :])

    return {"w": W_pad.astype(jnp.bfloat16), "b": b_pad.astype(jnp.float32)}


# ----------------------------------------------------------------------------
# forward_one
# ----------------------------------------------------------------------------
def _round_up(x, m):
    return ((x + m - 1) // m) * m


@functools.partial(jax.jit, static_argnames=("n_classes",))
def forward_one(x_nchw, folded, *, n_classes=6):
    b = x_nchw.shape[0]
    k_total = folded["w"].shape[0]
    nc_pad = folded["w"].shape[1]
    assert x_nchw.shape[1] * x_nchw.shape[2] * x_nchw.shape[3] == k_total

    # NCHW flattening matches the folded weight's index order: zero relayout here.
    x_flat = x_nchw.reshape(b, k_total).astype(jnp.bfloat16)

    # --- K tile: largest multiple of 128 dividing K, capped so weight block <= 2 MiB bf16.
    tk_cap = 8192
    if k_total <= tk_cap:
        tk = k_total
    else:
        tk = max(d for d in range(128, tk_cap + 1, 128) if k_total % d == 0)

    # --- Batch tile: ~6 MiB bf16 activation block, multiple of 16 sublanes, <= 512 rows.
    tb = max(16, min(512, ((6 * 1024 * 1024) // (tk * 2)) // 16 * 16))
    b_pad = _round_up(b, 16)
    tb = min(tb, b_pad)
    b_pad = _round_up(b_pad, tb)
    # v7x megacore: prefer >= 2 batch grid steps when the batch is big enough.
    if b_pad // tb == 1 and b_pad >= 32 and (b_pad // 2) % 16 == 0:
        tb = b_pad // 2

    if b_pad > b:
        x_flat = jnp.pad(x_flat, ((0, b_pad - b), (0, 0)))

    out = fused_forward_matmul(x_flat, folded["w"], folded["b"], tb=tb, tk=tk)
    return out[:b, :n_classes]


# ----------------------------------------------------------------------------
# Pure-JAX (un-folded, f32) reference of the same forward pass, for a self-check.
# ----------------------------------------------------------------------------
def _reference_forward(x_nchw, params, *, embed_rows_cols_2_channels=True, patch=32):
    b, ch, H, W = x_nchw.shape
    xcols = jnp.broadcast_to(
        (jnp.arange(W, dtype=jnp.float32) / W)[None, None, None, :], (b, 1, H, W)
    )
    xrows = jnp.broadcast_to(
        (jnp.arange(H, dtype=jnp.float32) / H)[None, None, :, None], (b, 1, H, W)
    )
    if embed_rows_cols_2_channels:
        x = jnp.concatenate([x_nchw, xcols, xrows], axis=1)
    else:
        x = jnp.concatenate([x_nchw, xcols * xrows], axis=1)
    cin = x.shape[1]
    xh = jnp.transpose(x, (0, 2, 3, 1)).reshape(b * H * W, cin)
    y = xh @ params["input_to_base_w"] + params["input_to_base_b"]
    y = y.reshape(b, H, W, 3)
    nh, nw = H // patch, W // patch
    pt = (
        y.reshape(b, nh, patch, nw, patch, 3)
        .transpose(0, 1, 3, 2, 4, 5)
        .reshape(b * nh * nw, patch * patch * 3)
    )
    cf = params["patch_w"].shape[1]
    feat = pt @ params["patch_w"] + params["patch_b"]
    feat = feat.reshape(b, nh, nw, cf).transpose(0, 3, 1, 2)   # (b, cf, nh, nw) NCHW
    m = feat.mean(axis=-1).reshape(b, cf * nh)                 # mean(dim=-1) + Flatten
    return m @ params["fc_w"] + params["fc_b"]


if __name__ == "__main__":
    # batch=2, image_channels=2, spatial 64x64 (m_bins=64 -> features_2d_size=2),
    # feature_chans=32, n_classes=6.  Input is NCHW like the PyTorch module.
    key = jax.random.PRNGKey(0)
    kx, kp = jax.random.split(key)
    x = jax.random.normal(kx, (2, 2, 64, 64), jnp.float32)

    params = init_params(
        kp,
        image_channels=2,
        embed_rows_cols_2_channels=True,
        feature_chans=32,
        patch=32,
        m_bins=64,
        n_classes=6,
    )
    folded = fold_params(
        params, nrows=64, ncols=64, patch=32, embed_rows_cols_2_channels=True
    )

    out = forward_one(x, folded, n_classes=6)
    out = jax.block_until_ready(out)
    assert out.shape == (2, 6), out.shape

    # Sanity check the fully-folded Pallas path against the un-folded f32 reference.
    # Tolerance covers bf16 quantization of the image + weight (coords are f32-folded).
    with jax.default_matmul_precision("highest"):
        ref = _reference_forward(x, params, embed_rows_cols_2_channels=True, patch=32)
    err = float(jnp.max(jnp.abs(out - ref)))
    scale = float(jnp.max(jnp.abs(ref))) + 1e-6
    assert err / scale < 0.05, (err, scale)

    print("KERNEL_OK")
</pallas_src>

<mosaic_0001>
module attributes {stable_mosaic.version = 11 : i64} {
  func.func @_matmul_bias_kernel(%arg0: i32, %arg1: i32, %arg2: memref<16x8192xbf16, #tpu.memory_space<vmem>>, %arg3: memref<8192x128xbf16, #tpu.memory_space<vmem>>, %arg4: memref<1x128xf32, #tpu.memory_space<vmem>>, %arg5: memref<16x128xf32, #tpu.memory_space<vmem>>, %arg6: memref<16x128xf32, #tpu.memory_space<vmem>>) attributes {dimension_semantics = [#tpu.dimension_semantics<parallel>, #tpu.dimension_semantics<arbitrary>], iteration_bounds = array<i64: 1, 1>, scalar_prefetch = 0 : i64, scratch_operands = 1 : i64, tpu.core_type = #tpu.core_type<tc>, window_params = [{transform_indices = @transform_0, window_bounds = array<i64: 16, 8192>}, {transform_indices = @transform_1, window_bounds = array<i64: 8192, 128>}, {pipeline_mode = #tpu.pipeline_mode<synchronous>, transform_indices = @transform_2, window_bounds = array<i64: 1, 128>}, {transform_indices = @transform_3, window_bounds = array<i64: 16, 128>}]} {
    %c0_i32 = arith.constant 0 : i32
    %0 = arith.cmpi eq, %arg1, %c0_i32 : i32
    %1 = arith.extui %0 : i1 to i32
    %c0_i32_0 = arith.constant 0 : i32
    %2 = arith.cmpi ne, %1, %c0_i32_0 : i32
    scf.if %2 {
      %cst_10 = arith.constant 0.000000e+00 : f32
      %12 = vector.broadcast %cst_10 : f32 to vector<16x128xf32>
      %c0_11 = arith.constant 0 : index
      %c0_12 = arith.constant 0 : index
      %13 = vector.load %arg6[%c0_11, %c0_12] : memref<16x128xf32, #tpu.memory_space<vmem>>, vector<16x128xf32>
      tpu.vector_store %arg6[%c0_11, %c0_12], %12 {strides = array<i32>} : memref<16x128xf32, #tpu.memory_space<vmem>>, vector<16x128xf32>,
    } else {
    }
    %c0 = arith.constant 0 : index
    %c0_1 = arith.constant 0 : index
    %3 = vector.load %arg6[%c0, %c0_1] : memref<16x128xf32, #tpu.memory_space<vmem>>, vector<16x128xf32>
    %c0_2 = arith.constant 0 : index
    %c0_3 = arith.constant 0 : index
    %4 = vector.load %arg2[%c0_2, %c0_3] : memref<16x8192xbf16, #tpu.memory_space<vmem>>, vector<16x8192xbf16>
    %c0_4 = arith.constant 0 : index
    %c0_5 = arith.constant 0 : index
    %5 = vector.load %arg3[%c0_4, %c0_5] : memref<8192x128xbf16, #tpu.memory_space<vmem>>, vector<8192x128xbf16>
    %cst = arith.constant dense<0.000000e+00> : vector<16x128xf32>
    %6 = tpu.matmul %4, %5, %cst {dimension_numbers = #tpu.dot_dimension_numbers<[1], [0], [0], [1], [0, 0, 1, 1], [], []>} : vector<16x8192xbf16>, vector<8192x128xbf16>, vector<16x128xf32> -> vector<16x128xf32>
    %7 = arith.addf %3, %6 : vector<16x128xf32>
    %c0_6 = arith.constant 0 : index
    %c0_7 = arith.constant 0 : index
    %8 = vector.load %arg6[%c0_6, %c0_7] : memref<16x128xf32, #tpu.memory_space<vmem>>, vector<16x128xf32>
    tpu.vector_store %arg6[%c0_6, %c0_7], %7 {strides = array<i32>} : memref<16x128xf32, #tpu.memory_space<vmem>>, vector<16x128xf32>,
    %c0_i32_8 = arith.constant 0 : i32
    %9 = arith.cmpi eq, %arg1, %c0_i32_8 : i32
    %10 = arith.extui %9 : i1 to i32
    %c0_i32_9 = arith.constant 0 : i32
    %11 = arith.cmpi ne, %10, %c0_i32_9 : i32
    scf.if %11 {
      %c0_10 = arith.constant 0 : index
      %c0_11 = arith.constant 0 : index
      %12 = vector.load %arg6[%c0_10, %c0_11] : memref<16x128xf32, #tpu.memory_space<vmem>>, vector<16x128xf32>
      %c0_12 = arith.constant 0 : index
      %c0_13 = arith.constant 0 : index
      %13 = vector.load %arg4[%c0_12, %c0_13] : memref<1x128xf32, #tpu.memory_space<vmem>>, vector<1x128xf32>
      %14 = vector.broadcast %13 : vector<1x128xf32> to vector<16x128xf32>
      %15 = arith.addf %12, %14 : vector<16x128xf32>
      %c0_14 = arith.constant 0 : index
      %c0_15 = arith.constant 0 : index
      %16 = vector.load %arg5[%c0_14, %c0_15] : memref<16x128xf32, #tpu.memory_space<vmem>>, vector<16x128xf32>
      tpu.vector_store %arg5[%c0_14, %c0_15], %15 {strides = array<i32>} : memref<16x128xf32, #tpu.memory_space<vmem>>, vector<16x128xf32>,
    } else {
    }
    return
  }
  func.func @transform_0(%arg0: i32, %arg1: i32) -> (i32, i32) {
    %c0_i32 = arith.constant 0 : i32
    return %arg0, %arg1 : i32, i32
  }
  func.func @transform_1(%arg0: i32, %arg1: i32) -> (i32, i32) {
    %c0_i32 = arith.constant 0 : i32
    %c0_i32_0 = arith.constant 0 : i32
    return %arg1, %c0_i32 : i32, i32
  }
  func.func @transform_2(%arg0: i32, %arg1: i32) -> (i32, i32) {
    %c0_i32 = arith.constant 0 : i32
    %c0_i32_0 = arith.constant 0 : i32
    %c0_i32_1 = arith.constant 0 : i32
    return %c0_i32, %c0_i32_0 : i32, i32
  }
  func.func @transform_3(%arg0: i32, %arg1: i32) -> (i32, i32) {
    %c0_i32 = arith.constant 0 : i32
    %c0_i32_0 = arith.constant 0 : i32
    return %arg0, %c0_i32 : i32, i32
  }
}

</mosaic_0001>

<bundles_post_ra>
// kernel: forward_one.1
= control target key start
LH: loop header
LB: loop body
LE: loop exit
PB: predicated region body
PF: predicated region fallthrough
CT: control target
= control target key end

     0   :  { %8 = vsyncpa [#allocation4], 0  ;;  %s8880_s0 = inlined_call_operand.vmem [shape: bf16[16,8192], index: 0, kind: input, shape index: {}]   ;;  %s8881_s1 = inlined_call_operand.hbm [shape: bf16[8192,128], index: 1, kind: input, shape index: {}]   ;;  %s8882_s2 = inlined_call_operand.hbm [shape: f32[1,128], index: 2, kind: input, shape index: {}]   ;;  %s8883_s3 = inlined_call_operand.vmem [shape: f32[16,128], index: 3, kind: output, shape index: {}]  }
   0x1   :  { %s16_s14 = sshll.u32 %s8881_s1, 4  ;;  %s17_s14 = int_to_ptr.hbm [resolvable:$true] %s16_s14 }
   0x2   :  { %9 = vsyncpa [#allocation6], 0  ;;  %s8388_s15 = smov [#allocation3]   ;;  %s30_s19 = sshll.u32 %s8882_s2, 4  ;;  %s31_s19 = int_to_ptr.hbm [resolvable:$true] %s30_s19 }
   0x3   :  { %s18_s16 = sshll.u32 %s8388_s15, 4  ;;  %s8389_s20 = smov 64   ;;  %s19_s16 = int_to_ptr.vmem [resolvable:$true] %s18_s16 }
   0x4   :  { %s8390_s21 = smov 4   ;;  %s8391_s22 = smov [#allocation5]  }
   0x5   :  { %24 = dma.hbm_to_vmem [thread:$0]  %s17_s14, 65536, %s19_s16, [#allocation4], %s8389_s20, %s8389_s20, %s8390_s21  }
   0x6   :  { %s32_s23 = sshll.u32 %s8391_s22, 4  ;;  %s33_s23 = int_to_ptr.vmem [resolvable:$true] %s32_s23 }
   0x7   :  { %35 = dma.hbm_to_vmem [thread:$0]  %s31_s19, 16, %s33_s23, [#allocation6]  }
   0x8   :  { %8384 = dma.done.wait [#allocation4], 65536  }
   0x9   :  { %8385 = vsyncadd [#allocation4], 4294901760 }
   0xa   :  { %8386 = dma.done.wait [#allocation6], 16  }
   0xb   :  { %8387 = vsyncadd [#allocation6], 4294967280  ;;  %v7826_v0 = vld [vmem:[#allocation3 + $0x38] sm:$0xff]  ;;  %v7825_v4 = vld [vmem:[#allocation3 + $0x30] sm:$0xff] }
   0xc   :  { %v7834_v1 = vld [vmem:[#allocation3 + $0x78] sm:$0xff]  ;;  %4532 = vmatpush.bf16.msra.mxu0 %v7826_v0  ;;  %v7833_v5 = vld [vmem:[#allocation3 + $0x70] sm:$0xff]  ;;  %v7824_v8 = vld [vmem:[#allocation3 + $0x28] sm:$0xff] }
   0xd   :  { %v7842_v2 = vld [vmem:[#allocation3 + $0xb8] sm:$0xff]  ;;  %4546 = vmatpush.bf16.msra.mxu1 %v7834_v1  ;;  %v7841_v6 = vld [vmem:[#allocation3 + $0xb0] sm:$0xff]  ;;  %v7832_v9 = vld [vmem:[#allocation3 + $0x68] sm:$0xff] }
   0xe   :  { %v7850_v3 = vld [vmem:[#allocation3 + $0xf8] sm:$0xff]  ;;  %4560 = vmatpush.bf16.msra.mxu2 %v7842_v2  ;;  %v7849_v7 = vld [vmem:[#allocation3 + $0xf0] sm:$0xff]  ;;  %v7840_v10 = vld [vmem:[#allocation3 + $0xa8] sm:$0xff] }
   0xf   :  { %4574 = vmatpush.bf16.msra.mxu3 %v7850_v3  ;;  %v7848_v11 = vld [vmem:[#allocation3 + $0xe8] sm:$0xff]  ;;  %v7823_v12 = vld [vmem:[#allocation3 + $0x20] sm:$0xff]  ;;  %v7822_v16 = vld [vmem:[#allocation3 + $0x18] sm:$0xff] }
  0x10   :  { %4533 = vmatpush.bf16.msra.mxu0 %v7825_v4  ;;  %v7831_v13 = vld [vmem:[#allocation3 + $0x60] sm:$0xff]  ;;  %v7830_v17 = vld [vmem:[#allocation3 + $0x58] sm:$0xff]  ;;  %v7821_v20 = vld [vmem:[#allocation3 + $0x10] sm:$0xff] }
  0x11   :  { %4547 = vmatpush.bf16.msra.mxu1 %v7833_v5  ;;  %v7839_v14 = vld [vmem:[#allocation3 + $0xa0] sm:$0xff]  ;;  %v7838_v18 = vld [vmem:[#allocation3 + $0x98] sm:$0xff]  ;;  %v7829_v21 = vld [vmem:[#allocation3 + $0x50] sm:$0xff] }
  0x12   :  { %4561 = vmatpush.bf16.msra.mxu2 %v7841_v6  ;;  %v7847_v15 = vld [vmem:[#allocation3 + $0xe0] sm:$0xff]  ;;  %v7846_v19 = vld [vmem:[#allocation3 + $0xd8] sm:$0xff]  ;;  %v7837_v22 = vld [vmem:[#allocation3 + $0x90] sm:$0xff] }
  0x13   :  { %4575 = vmatpush.bf16.msra.mxu3 %v7849_v7  ;;  %v7845_v23 = vld [vmem:[#allocation3 + $0xd0] sm:$0xff]  ;;  %v7820_v24 = vld [vmem:[#allocation3 + $0x8] sm:$0xff]  ;;  %v7819_v28 = vld [vmem:[#allocation3] sm:$0xff] }
  0x14   :  { %4534 = vmatpush.bf16.msra.mxu0 %v7824_v8  ;;  %v7828_v25 = vld [vmem:[#allocation3 + $0x48] sm:$0xff]  ;;  %v7827_v29 = vld [vmem:[#allocation3 + $0x40] sm:$0xff]  ;;  %v7858_v32 = vld [vmem:[#allocation3 + $0x138] sm:$0xff] }
  0x15   :  { %4548 = vmatpush.bf16.msra.mxu1 %v7832_v9  ;;  %v7836_v26 = vld [vmem:[#allocation3 + $0x88] sm:$0xff]  ;;  %v7835_v30 = vld [vmem:[#allocation3 + $0x80] sm:$0xff]  ;;  %v7866_v33 = vld [vmem:[#allocation3 + $0x178] sm:$0xff] }
  0x16   :  { %4562 = vmatpush.bf16.msra.mxu2 %v7840_v10  ;;  %v7844_v27 = vld [vmem:[#allocation3 + $0xc8] sm:$0xff]  ;;  %v7843_v31 = vld [vmem:[#allocation3 + $0xc0] sm:$0xff]  ;;  %v7874_v42 = vld [vmem:[#allocation3 + $0x1b8] sm:$0xff] }
  0x17   :  { %4576 = vmatpush.bf16.msra.mxu3 %v7848_v11  ;;  %v5453_v34 = vld [vmem:[%s8880_s0] sm:$0xf]  ;;  %v5461_v36 = vld [vmem:[%s8880_s0 + $0x8] sm:$0xf]  ;;  %v7755_v38 = vld [vmem:[%s8880_s0 + $0x4] sm:$0xf] }
  0x18   :  { %4535 = vmatpush.bf16.msra.mxu0 %v7823_v12  ;;  %v7787_v35 = vld [vmem:[%s8880_s0 + $0xfc] sm:$0xf0]  ;;  %v7788_v37 = vld [vmem:[%s8880_s0 + $0x104] sm:$0xf0]  ;;  %v5455_v39 = vld [vmem:[%s8880_s0 + $0x100] sm:$0xf0] }
  0x19   :  { %4549 = vmatpush.bf16.msra.mxu1 %v7831_v13  ;;  %v7756_v40 = vld [vmem:[%s8880_s0 + $0xc] sm:$0xf]  ;;  %v7882_v43 = vld [vmem:[#allocation3 + $0x1f8] sm:$0xff]  ;;  %v5454_v44 = vor.u32 %v7787_v35, %v5453_v34  ;;  %v5462_v45 = vor.u32 %v7788_v37, %v5461_v36  ;;  %v5458_v46 = vor.u32 %v7755_v38, %v5455_v39  ;;  %v7857_v48 = vld [vmem:[#allocation3 + $0x130] sm:$0xff] }
  0x1a   :  { %4563 = vmatpush.bf16.msra.mxu2 %v7839_v14  ;;  %v5463_v41 = vld [vmem:[%s8880_s0 + $0x108] sm:$0xf0]  ;;  %v7865_v49 = vld [vmem:[#allocation3 + $0x170] sm:$0xff]  ;;  %v7855_v56 = vld [vmem:[#allocation3 + $0x120] sm:$0xff] }
  0x1b   :  { %4577 = vmatpush.bf16.msra.mxu3 %v7847_v15  ;;  %v5466_v47 = vor.u32 %v7756_v40, %v5463_v41  ;;  %v7873_v50 = vld [vmem:[#allocation3 + $0x1b0] sm:$0xff]  ;;  %v7856_v52 = vld [vmem:[#allocation3 + $0x128] sm:$0xff]  ;;  %v7863_v57 = vld [vmem:[#allocation3 + $0x160] sm:$0xff] }
  0x1c   :  { %4536 = vmatpush.bf16.msra.mxu0 %v7822_v16  ;;  %v7881_v51 = vld [vmem:[#allocation3 + $0x1f0] sm:$0xff]  ;;  %v7864_v53 = vld [vmem:[#allocation3 + $0x168] sm:$0xff]  ;;  %v7871_v58 = vld [vmem:[#allocation3 + $0x1a0] sm:$0xff] }
  0x1d   :  { %4550 = vmatpush.bf16.msra.mxu1 %v7830_v17  ;;  %v7872_v54 = vld [vmem:[#allocation3 + $0x1a8] sm:$0xff]  ;;  %v7879_v59 = vld [vmem:[#allocation3 + $0x1e0] sm:$0xff]  ;;  %v7854_v60 = vld [vmem:[#allocation3 + $0x118] sm:$0xff] }
  0x1e   :  { %4564 = vmatpush.bf16.msra.mxu2 %v7838_v18  ;;  %v7880_v55 = vld [vmem:[#allocation3 + $0x1e8] sm:$0xff]  ;;  %v7862_v61 = vld [vmem:[#allocation3 + $0x158] sm:$0xff]  ;;  %v7853_v0 = vld [vmem:[#allocation3 + $0x110] sm:$0xff] }
  0x1f   :  { %4578 = vmatpush.bf16.msra.mxu3 %v7846_v19  ;;  %v7870_v62 = vld [vmem:[#allocation3 + $0x198] sm:$0xff]  ;;  %v7861_v1 = vld [vmem:[#allocation3 + $0x150] sm:$0xff]  ;;  %v7852_v4 = vld [vmem:[#allocation3 + $0x108] sm:$0xff] }
  0x20   :  { %4537 = vmatpush.bf16.msra.mxu0 %v7821_v20  ;;  %v7878_v63 = vld [vmem:[#allocation3 + $0x1d8] sm:$0xff]  ;;  %v7869_v2 = vld [vmem:[#allocation3 + $0x190] sm:$0xff]  ;;  %v7860_v5 = vld [vmem:[#allocation3 + $0x148] sm:$0xff] }
  0x21   :  { %4551 = vmatpush.bf16.msra.mxu1 %v7829_v21  ;;  %v7877_v3 = vld [vmem:[#allocation3 + $0x1d0] sm:$0xff]  ;;  %v7868_v6 = vld [vmem:[#allocation3 + $0x188] sm:$0xff]  ;;  %v7851_v8 = vld [vmem:[#allocation3 + $0x100] sm:$0xff] }
  0x22   :  { %4565 = vmatpush.bf16.msra.mxu2 %v7837_v22  ;;  %v7876_v7 = vld [vmem:[#allocation3 + $0x1c8] sm:$0xff]  ;;  %v7859_v9 = vld [vmem:[#allocation3 + $0x140] sm:$0xff]  ;;  %v7890_v12 = vld [vmem:[#allocation3 + $0x238] sm:$0xff] }
  0x23   :  { %4579 = vmatpush.bf16.msra.mxu3 %v7845_v23  ;;  %v7867_v10 = vld [vmem:[#allocation3 + $0x180] sm:$0xff]  ;;  %v7898_v13 = vld [vmem:[#allocation3 + $0x278] sm:$0xff]  ;;  %v5469_v14 = vld [vmem:[%s8880_s0 + $0x10] sm:$0xf] }
  0x24   :  { %4538 = vmatpush.bf16.msra.mxu0 %v7820_v24  ;;  %v7875_v11 = vld [vmem:[#allocation3 + $0x1c0] sm:$0xff]  ;;  %v7789_v15 = vld [vmem:[%s8880_s0 + $0x10c] sm:$0xf0]  ;;  %v5477_v16 = vld [vmem:[%s8880_s0 + $0x18] sm:$0xf] }
  0x25   :  { %4552 = vmatpush.bf16.msra.mxu1 %v7828_v25  ;;  %v7790_v17 = vld [vmem:[%s8880_s0 + $0x114] sm:$0xf0]  ;;  %v7757_v18 = vld [vmem:[%s8880_s0 + $0x14] sm:$0xf]  ;;  %v7758_v20 = vld [vmem:[%s8880_s0 + $0x1c] sm:$0xf]  ;;  %v5470_v24 = vor.u32 %v7789_v15, %v5469_v14 }
  0x26   :  { %4566 = vmatpush.bf16.msra.mxu2 %v7836_v26  ;;  %v5471_v19 = vld [vmem:[%s8880_s0 + $0x110] sm:$0xf0]  ;;  %v5479_v21 = vld [vmem:[%s8880_s0 + $0x118] sm:$0xf0]  ;;  %v5478_v25 = vor.u32 %v7790_v17, %v5477_v16  ;;  %v7904_v34 = vld [vmem:[#allocation3 + $0x2a8] sm:$0xff] }
  0x27   :  { %4580 = vmatpush.bf16.msra.mxu3 %v7844_v27  ;;  %v7906_v22 = vld [vmem:[#allocation3 + $0x2b8] sm:$0xff]  ;;  %v5474_v26 = vor.u32 %v7757_v18, %v5471_v19  ;;  %v5482_v27 = vor.u32 %v7758_v20, %v5479_v21  ;;  %v7912_v35 = vld [vmem:[#allocation3 + $0x2e8] sm:$0xff]  ;;  %v7887_v36 = vld [vmem:[#allocation3 + $0x220] sm:$0xff] }
  0x28   :  { %4539 = vmatpush.bf16.msra.mxu0 %v7819_v28  ;;  %v7914_v23 = vld [vmem:[#allocation3 + $0x2f8] sm:$0xff]  ;;  %v7889_v28 = vld [vmem:[#allocation3 + $0x230] sm:$0xff]  ;;  %v7895_v37 = vld [vmem:[#allocation3 + $0x260] sm:$0xff] }
  0x29   :  { %4553 = vmatpush.bf16.msra.mxu1 %v7827_v29  ;;  %v7897_v29 = vld [vmem:[#allocation3 + $0x270] sm:$0xff]  ;;  %v7903_v38 = vld [vmem:[#allocation3 + $0x2a0] sm:$0xff]  ;;  %v7886_v40 = vld [vmem:[#allocation3 + $0x218] sm:$0xff] }
  0x2a   :  { %4567 = vmatpush.bf16.msra.mxu2 %v7835_v30  ;;  %v7905_v30 = vld [vmem:[#allocation3 + $0x2b0] sm:$0xff]  ;;  %v7911_v39 = vld [vmem:[#allocation3 + $0x2e0] sm:$0xff]  ;;  %v7894_v41 = vld [vmem:[#allocation3 + $0x258] sm:$0xff] }
  0x2b   :  { %4581 = vmatpush.bf16.msra.mxu3 %v7843_v31  ;;  %4540 = vmatmul.bf16.vlgmr.msra.gmra.mxu0 %v5454_v44  ;;  %v7913_v31 = vld [vmem:[#allocation3 + $0x2f0] sm:$0xff]  ;;  %v7936_v14 = vld [vmem:[#allocation3 + $0x3a8] sm:$0xff]  ;;  %v7919_v16 = vld [vmem:[#allocation3 + $0x320] sm:$0xff] }
  0x2c   :  { %4588 = vmatpush.bf16.msrb.mxu0 %v7858_v32  ;;  %4554 = vmatmul.bf16.vlgmr.msra.gmra.mxu1 %v5458_v46  ;;  %v7888_v32 = vld [vmem:[#allocation3 + $0x228] sm:$0xff]  ;;  %v7885_v44 = vld [vmem:[#allocation3 + $0x210] sm:$0xff]  ;;  %v7927_v17 = vld [vmem:[#allocation3 + $0x360] sm:$0xff] }
  0x2d   :  { %4602 = vmatpush.bf16.msrb.mxu1 %v7866_v33  ;;  %4568 = vmatmul.bf16.vlgmr.msra.gmra.mxu2 %v5462_v45  ;;  %v7896_v33 = vld [vmem:[#allocation3 + $0x268] sm:$0xff]  ;;  %v7893_v45 = vld [vmem:[#allocation3 + $0x250] sm:$0xff]  ;;  %v7935_v18 = vld [vmem:[#allocation3 + $0x3a0] sm:$0xff] }
  0x2e   :  { %4616 = vmatpush.bf16.msrb.mxu2 %v7874_v42  ;;  %4582 = vmatmul.bf16.vlgmr.msra.gmra.mxu3 %v5466_v47  ;;  %v7902_v42 = vld [vmem:[#allocation3 + $0x298] sm:$0xff]  ;;  %v7901_v46 = vld [vmem:[#allocation3 + $0x290] sm:$0xff]  ;;  %v7944_v15 = vld [vmem:[#allocation3 + $0x3e8] sm:$0xff] }
  0x2f   :  { %4630 = vmatpush.bf16.msrb.mxu3 %v7882_v43  ;;  %v7910_v43 = vld [vmem:[#allocation3 + $0x2d8] sm:$0xff]  ;;  %v7909_v47 = vld [vmem:[#allocation3 + $0x2d0] sm:$0xff]  ;;  %v7943_v19 = vld [vmem:[#allocation3 + $0x3e0] sm:$0xff] }
  0x30   :  { %4589 = vmatpush.bf16.msrb.mxu0 %v7857_v48  ;;  %v7884_v48 = vld [vmem:[#allocation3 + $0x208] sm:$0xff]  ;;  %v7918_v20 = vld [vmem:[#allocation3 + $0x318] sm:$0xff] }
  0x31   :  { %4603 = vmatpush.bf16.msrb.mxu1 %v7865_v49  ;;  %v7892_v49 = vld [vmem:[#allocation3 + $0x248] sm:$0xff]  ;;  %v7926_v21 = vld [vmem:[#allocation3 + $0x358] sm:$0xff] }
  0x32   :  { %4617 = vmatpush.bf16.msrb.mxu2 %v7873_v50  ;;  %v7900_v50 = vld [vmem:[#allocation3 + $0x288] sm:$0xff] }
  0x33   :  { %4631 = vmatpush.bf16.msrb.mxu3 %v7881_v51  ;;  %v7908_v51 = vld [vmem:[#allocation3 + $0x2c8] sm:$0xff] }
  0x34   :  { %4590 = vmatpush.bf16.msrb.mxu0 %v7856_v52  ;;  %v7883_v52 = vld [vmem:[#allocation3 + $0x200] sm:$0xff] }
  0x35   :  { %4604 = vmatpush.bf16.msrb.mxu1 %v7864_v53  ;;  %v7891_v53 = vld [vmem:[#allocation3 + $0x240] sm:$0xff] }
  0x36   :  { %4618 = vmatpush.bf16.msrb.mxu2 %v7872_v54  ;;  %v7899_v54 = vld [vmem:[#allocation3 + $0x280] sm:$0xff] }
  0x37   :  { %4632 = vmatpush.bf16.msrb.mxu3 %v7880_v55  ;;  %v7907_v55 = vld [vmem:[#allocation3 + $0x2c0] sm:$0xff] }
  0x38   :  { %4591 = vmatpush.bf16.msrb.mxu0 %v7855_v56  ;;  %v7922_v56 = vld [vmem:[#allocation3 + $0x338] sm:$0xff] }
  0x39   :  { %4605 = vmatpush.bf16.msrb.mxu1 %v7863_v57  ;;  %v7930_v57 = vld [vmem:[#allocation3 + $0x378] sm:$0xff] }
  0x3a   :  { %4619 = vmatpush.bf16.msrb.mxu2 %v7871_v58  ;;  %v5485_v58 = vld [vmem:[%s8880_s0 + $0x20] sm:$0xf] }
  0x3b   :  { %4633 = vmatpush.bf16.msrb.mxu3 %v7879_v59  ;;  %v7791_v59 = vld [vmem:[%s8880_s0 + $0x11c] sm:$0xf0] }
  0x3c   :  { %4592 = vmatpush.bf16.msrb.mxu0 %v7854_v60  ;;  %v5493_v60 = vld [vmem:[%s8880_s0 + $0x28] sm:$0xf] }
  0x3d   :  { %4606 = vmatpush.bf16.msrb.mxu1 %v7862_v61  ;;  %v7792_v61 = vld [vmem:[%s8880_s0 + $0x124] sm:$0xf0] }
  0x3e   :  { %4620 = vmatpush.bf16.msrb.mxu2 %v7870_v62  ;;  %v7759_v62 = vld [vmem:[%s8880_s0 + $0x24] sm:$0xf] }
  0x3f   :  { %4634 = vmatpush.bf16.msrb.mxu3 %v7878_v63  ;;  %v5487_v63 = vld [vmem:[%s8880_s0 + $0x120] sm:$0xf0] }
  0x40   :  { %4593 = vmatpush.bf16.msrb.mxu0 %v7853_v0  ;;  %v7760_v0 = vld [vmem:[%s8880_s0 + $0x2c] sm:$0xf] }
  0x41   :  { %4607 = vmatpush.bf16.msrb.mxu1 %v7861_v1  ;;  %v5495_v1 = vld [vmem:[%s8880_s0 + $0x128] sm:$0xf0] }
  0x42   :  { %4621 = vmatpush.bf16.msrb.mxu2 %v7869_v2  ;;  %v7938_v2 = vld [vmem:[#allocation3 + $0x3b8] sm:$0xff] }
  0x43   :  { %4635 = vmatpush.bf16.msrb.mxu3 %v7877_v3  ;;  %v7946_v3 = vld [vmem:[#allocation3 + $0x3f8] sm:$0xff] }
  0x44   :  { %4594 = vmatpush.bf16.msrb.mxu0 %v7852_v4  ;;  %v5486_v4 = vor.u32 %v7791_v59, %v5485_v58  ;;  %v7968_v58 = vld [vmem:[#allocation3 + $0x4a8] sm:$0xff] }
  0x45   :  { %4608 = vmatpush.bf16.msrb.mxu1 %v7860_v5  ;;  %v5494_v5 = vor.u32 %v7792_v61, %v5493_v60  ;;  %v7976_v59 = vld [vmem:[#allocation3 + $0x4e8] sm:$0xff]  ;;  %v7951_v60 = vld [vmem:[#allocation3 + $0x420] sm:$0xff] }
  0x46   :  { %4622 = vmatpush.bf16.msrb.mxu2 %v7868_v6  ;;  %v5490_v6 = vor.u32 %v7759_v62, %v5487_v63  ;;  %v7959_v61 = vld [vmem:[#allocation3 + $0x460] sm:$0xff] }
  0x47   :  { %4636 = vmatpush.bf16.msrb.mxu3 %v7876_v7  ;;  %v5498_v7 = vor.u32 %v7760_v0, %v5495_v1  ;;  %v7967_v62 = vld [vmem:[#allocation3 + $0x4a0] sm:$0xff]  ;;  %v7950_v0 = vld [vmem:[#allocation3 + $0x418] sm:$0xff] }
  0x48   :  { %4595 = vmatpush.bf16.msrb.mxu0 %v7851_v8  ;;  %v7921_v8 = vld [vmem:[#allocation3 + $0x330] sm:$0xff]  ;;  %v7975_v63 = vld [vmem:[#allocation3 + $0x4e0] sm:$0xff]  ;;  %v7958_v1 = vld [vmem:[#allocation3 + $0x458] sm:$0xff] }
  0x49   :  { %4609 = vmatpush.bf16.msrb.mxu1 %v7859_v9  ;;  %v7929_v9 = vld [vmem:[#allocation3 + $0x370] sm:$0xff] }
  0x4a   :  { %4623 = vmatpush.bf16.msrb.mxu2 %v7867_v10  ;;  %v7937_v10 = vld [vmem:[#allocation3 + $0x3b0] sm:$0xff] }
  0x4b   :  { %4637 = vmatpush.bf16.msrb.mxu3 %v7875_v11  ;;  %4596 = vmatmul.bf16.vlgmr.msrb.gmra.mxu0 %v5470_v24  ;;  %v7945_v11 = vld [vmem:[#allocation3 + $0x3f0] sm:$0xff] }
  0x4c   :  { %4644 = vmatpush.bf16.msra.mxu0 %v7890_v12  ;;  %4610 = vmatmul.bf16.vlgmr.msrb.gmra.mxu1 %v5474_v26  ;;  %v7920_v12 = vld [vmem:[#allocation3 + $0x328] sm:$0xff]  ;;  %v7917_v24 = vld [vmem:[#allocation3 + $0x310] sm:$0xff] }
  0x4d   :  { %4658 = vmatpush.bf16.msra.mxu1 %v7898_v13  ;;  %4624 = vmatmul.bf16.vlgmr.msrb.gmra.mxu2 %v5478_v25  ;;  %v7928_v13 = vld [vmem:[#allocation3 + $0x368] sm:$0xff]  ;;  %v7925_v25 = vld [vmem:[#allocation3 + $0x350] sm:$0xff] }
  0x4e   :  { %4672 = vmatpush.bf16.msra.mxu2 %v7906_v22  ;;  %4638 = vmatmul.bf16.vlgmr.msrb.gmra.mxu3 %v5482_v27  ;;  %v7934_v22 = vld [vmem:[#allocation3 + $0x398] sm:$0xff]  ;;  %v7933_v26 = vld [vmem:[#allocation3 + $0x390] sm:$0xff] }
  0x4f   :  { %4686 = vmatpush.bf16.msra.mxu3 %v7914_v23  ;;  %v7942_v23 = vld [vmem:[#allocation3 + $0x3d8] sm:$0xff]  ;;  %v7941_v27 = vld [vmem:[#allocation3 + $0x3d0] sm:$0xff] }
  0x50   :  { %4645 = vmatpush.bf16.msra.mxu0 %v7889_v28  ;;  %v7916_v28 = vld [vmem:[#allocation3 + $0x308] sm:$0xff] }
  0x51   :  { %4659 = vmatpush.bf16.msra.mxu1 %v7897_v29  ;;  %v7924_v29 = vld [vmem:[#allocation3 + $0x348] sm:$0xff] }
  0x52   :  { %4673 = vmatpush.bf16.msra.mxu2 %v7905_v30  ;;  %v7932_v30 = vld [vmem:[#allocation3 + $0x388] sm:$0xff] }
  0x53   :  { %4687 = vmatpush.bf16.msra.mxu3 %v7913_v31  ;;  %v7940_v31 = vld [vmem:[#allocation3 + $0x3c8] sm:$0xff] }
  0x54   :  { %4646 = vmatpush.bf16.msra.mxu0 %v7888_v32  ;;  %v7915_v32 = vld [vmem:[#allocation3 + $0x300] sm:$0xff] }
  0x55   :  { %4660 = vmatpush.bf16.msra.mxu1 %v7896_v33  ;;  %v7923_v33 = vld [vmem:[#allocation3 + $0x340] sm:$0xff] }
  0x56   :  { %4674 = vmatpush.bf16.msra.mxu2 %v7904_v34  ;;  %v7931_v34 = vld [vmem:[#allocation3 + $0x380] sm:$0xff] }
  0x57   :  { %4688 = vmatpush.bf16.msra.mxu3 %v7912_v35  ;;  %v7939_v35 = vld [vmem:[#allocation3 + $0x3c0] sm:$0xff] }
  0x58   :  { %4647 = vmatpush.bf16.msra.mxu0 %v7887_v36  ;;  %v7954_v36 = vld [vmem:[#allocation3 + $0x438] sm:$0xff] }
  0x59   :  { %4661 = vmatpush.bf16.msra.mxu1 %v7895_v37  ;;  %v7962_v37 = vld [vmem:[#allocation3 + $0x478] sm:$0xff] }
  0x5a   :  { %4675 = vmatpush.bf16.msra.mxu2 %v7903_v38  ;;  %v5501_v38 = vld [vmem:[%s8880_s0 + $0x30] sm:$0xf] }
  0x5b   :  { %4689 = vmatpush.bf16.msra.mxu3 %v7911_v39  ;;  %v7793_v39 = vld [vmem:[%s8880_s0 + $0x12c] sm:$0xf0] }
  0x5c   :  { %4648 = vmatpush.bf16.msra.mxu0 %v7886_v40  ;;  %v5509_v40 = vld [vmem:[%s8880_s0 + $0x38] sm:$0xf] }
  0x5d   :  { %4662 = vmatpush.bf16.msra.mxu1 %v7894_v41  ;;  %v7794_v41 = vld [vmem:[%s8880_s0 + $0x134] sm:$0xf0] }
  0x5e   :  { %4676 = vmatpush.bf16.msra.mxu2 %v7902_v42  ;;  %v7761_v42 = vld [vmem:[%s8880_s0 + $0x34] sm:$0xf] }
  0x5f   :  { %4690 = vmatpush.bf16.msra.mxu3 %v7910_v43  ;;  %v5503_v43 = vld [vmem:[%s8880_s0 + $0x130] sm:$0xf0] }
  0x60   :  { %4649 = vmatpush.bf16.msra.mxu0 %v7885_v44  ;;  %v7762_v44 = vld [vmem:[%s8880_s0 + $0x3c] sm:$0xf] }
  0x61   :  { %4663 = vmatpush.bf16.msra.mxu1 %v7893_v45  ;;  %v5511_v45 = vld [vmem:[%s8880_s0 + $0x138] sm:$0xf0] }
  0x62   :  { %4677 = vmatpush.bf16.msra.mxu2 %v7901_v46  ;;  %v7970_v46 = vld [vmem:[#allocation3 + $0x4b8] sm:$0xff] }
  0x63   :  { %4691 = vmatpush.bf16.msra.mxu3 %v7909_v47  ;;  %v7978_v47 = vld [vmem:[#allocation3 + $0x4f8] sm:$0xff] }
  0x64   :  { %4650 = vmatpush.bf16.msra.mxu0 %v7884_v48  ;;  %v5502_v48 = vor.u32 %v7793_v39, %v5501_v38  ;;  %v8000_v38 = vld [vmem:[#allocation3 + $0x5a8] sm:$0xff] }
  0x65   :  { %4664 = vmatpush.bf16.msra.mxu1 %v7892_v49  ;;  %v5510_v49 = vor.u32 %v7794_v41, %v5509_v40  ;;  %v8008_v39 = vld [vmem:[#allocation3 + $0x5e8] sm:$0xff]  ;;  %v7983_v40 = vld [vmem:[#allocation3 + $0x520] sm:$0xff] }
  0x66   :  { %4678 = vmatpush.bf16.msra.mxu2 %v7900_v50  ;;  %v5506_v50 = vor.u32 %v7761_v42, %v5503_v43  ;;  %v7991_v41 = vld [vmem:[#allocation3 + $0x560] sm:$0xff] }
  0x67   :  { %4692 = vmatpush.bf16.msra.mxu3 %v7908_v51  ;;  %v5514_v51 = vor.u32 %v7762_v44, %v5511_v45  ;;  %v7999_v44 = vld [vmem:[#allocation3 + $0x5a0] sm:$0xff] }
  0x68   :  { %4651 = vmatpush.bf16.msra.mxu0 %v7883_v52  ;;  %v7953_v52 = vld [vmem:[#allocation3 + $0x430] sm:$0xff]  ;;  %v8007_v45 = vld [vmem:[#allocation3 + $0x5e0] sm:$0xff] }
  0x69   :  { %4665 = vmatpush.bf16.msra.mxu1 %v7891_v53  ;;  %v7961_v53 = vld [vmem:[#allocation3 + $0x470] sm:$0xff] }
  0x6a   :  { %4679 = vmatpush.bf16.msra.mxu2 %v7899_v54  ;;  %v7969_v54 = vld [vmem:[#allocation3 + $0x4b0] sm:$0xff] }
  0x6b   :  { %4693 = vmatpush.bf16.msra.mxu3 %v7907_v55  ;;  %4652 = vmatmul.bf16.vlgmr.msra.gmra.mxu0 %v5486_v4  ;;  %v7977_v55 = vld [vmem:[#allocation3 + $0x4f0] sm:$0xff] }
  0x6c   :  { %4700 = vmatpush.bf16.msrb.mxu0 %v7922_v56  ;;  %4666 = vmatmul.bf16.vlgmr.msra.gmra.mxu1 %v5490_v6  ;;  %v7952_v56 = vld [vmem:[#allocation3 + $0x428] sm:$0xff]  ;;  %v7949_v4 = vld [vmem:[#allocation3 + $0x410] sm:$0xff] }
  0x6d   :  { %4714 = vmatpush.bf16.msrb.mxu1 %v7930_v57  ;;  %4680 = vmatmul.bf16.vlgmr.msra.gmra.mxu2 %v5494_v5  ;;  %v7960_v57 = vld [vmem:[#allocation3 + $0x468] sm:$0xff]  ;;  %v7957_v5 = vld [vmem:[#allocation3 + $0x450] sm:$0xff] }
  0x6e   :  { %4728 = vmatpush.bf16.msrb.mxu2 %v7938_v2  ;;  %4694 = vmatmul.bf16.vlgmr.msra.gmra.mxu3 %v5498_v7  ;;  %v7966_v2 = vld [vmem:[#allocation3 + $0x498] sm:$0xff]  ;;  %v7965_v6 = vld [vmem:[#allocation3 + $0x490] sm:$0xff] }
  0x6f   :  { %4742 = vmatpush.bf16.msrb.mxu3 %v7946_v3  ;;  %v7974_v3 = vld [vmem:[#allocation3 + $0x4d8] sm:$0xff]  ;;  %v7973_v7 = vld [vmem:[#allocation3 + $0x4d0] sm:$0xff] }
  0x70   :  { %4701 = vmatpush.bf16.msrb.mxu0 %v7921_v8  ;;  %v7948_v8 = vld [vmem:[#allocation3 + $0x408] sm:$0xff] }
  0x71   :  { %4715 = vmatpush.bf16.msrb.mxu1 %v7929_v9  ;;  %v7956_v9 = vld [vmem:[#allocation3 + $0x448] sm:$0xff] }
  0x72   :  { %4729 = vmatpush.bf16.msrb.mxu2 %v7937_v10  ;;  %v7964_v10 = vld [vmem:[#allocation3 + $0x488] sm:$0xff] }
  0x73   :  { %4743 = vmatpush.bf16.msrb.mxu3 %v7945_v11  ;;  %v7972_v11 = vld [vmem:[#allocation3 + $0x4c8] sm:$0xff] }
  0x74   :  { %4702 = vmatpush.bf16.msrb.mxu0 %v7920_v12  ;;  %v7947_v12 = vld [vmem:[#allocation3 + $0x400] sm:$0xff] }
  0x75   :  { %4716 = vmatpush.bf16.msrb.mxu1 %v7928_v13  ;;  %v7955_v13 = vld [vmem:[#allocation3 + $0x440] sm:$0xff] }
  0x76   :  { %4730 = vmatpush.bf16.msrb.mxu2 %v7936_v14  ;;  %v7963_v14 = vld [vmem:[#allocation3 + $0x480] sm:$0xff] }
  0x77   :  { %4744 = vmatpush.bf16.msrb.mxu3 %v7944_v15  ;;  %v7971_v15 = vld [vmem:[#allocation3 + $0x4c0] sm:$0xff] }
  0x78   :  { %4703 = vmatpush.bf16.msrb.mxu0 %v7919_v16  ;;  %v7986_v16 = vld [vmem:[#allocation3 + $0x538] sm:$0xff] }
  0x79   :  { %4717 = vmatpush.bf16.msrb.mxu1 %v7927_v17  ;;  %v7994_v17 = vld [vmem:[#allocation3 + $0x578] sm:$0xff] }
  0x7a   :  { %4731 = vmatpush.bf16.msrb.mxu2 %v7935_v18  ;;  %v5517_v18 = vld [vmem:[%s8880_s0 + $0x40] sm:$0xf] }
  0x7b   :  { %4745 = vmatpush.bf16.msrb.mxu3 %v7943_v19  ;;  %v7795_v19 = vld [vmem:[%s8880_s0 + $0x13c] sm:$0xf0] }
  0x7c   :  { %4704 = vmatpush.bf16.msrb.mxu0 %v7918_v20  ;;  %v5525_v20 = vld [vmem:[%s8880_s0 + $0x48] sm:$0xf] }
  0x7d   :  { %4718 = vmatpush.bf16.msrb.mxu1 %v7926_v21  ;;  %v7796_v21 = vld [vmem:[%s8880_s0 + $0x144] sm:$0xf0] }
  0x7e   :  { %4732 = vmatpush.bf16.msrb.mxu2 %v7934_v22  ;;  %v7763_v22 = vld [vmem:[%s8880_s0 + $0x44] sm:$0xf] }
  0x7f   :  { %4746 = vmatpush.bf16.msrb.mxu3 %v7942_v23  ;;  %v5519_v23 = vld [vmem:[%s8880_s0 + $0x140] sm:$0xf0] }
  0x80   :  { %4705 = vmatpush.bf16.msrb.mxu0 %v7917_v24  ;;  %v7764_v24 = vld [vmem:[%s8880_s0 + $0x4c] sm:$0xf] }
  0x81   :  { %4719 = vmatpush.bf16.msrb.mxu1 %v7925_v25  ;;  %v5527_v25 = vld [vmem:[%s8880_s0 + $0x148] sm:$0xf0] }
  0x82   :  { %4733 = vmatpush.bf16.msrb.mxu2 %v7933_v26  ;;  %v8002_v26 = vld [vmem:[#allocation3 + $0x5b8] sm:$0xff] }
  0x83   :  { %4747 = vmatpush.bf16.msrb.mxu3 %v7941_v27  ;;  %v8010_v27 = vld [vmem:[#allocation3 + $0x5f8] sm:$0xff] }
  0x84   :  { %4706 = vmatpush.bf16.msrb.mxu0 %v7916_v28  ;;  %v5518_v28 = vor.u32 %v7795_v19, %v5517_v18 }
  0x85   :  { %4720 = vmatpush.bf16.msrb.mxu1 %v7924_v29  ;;  %v5526_v29 = vor.u32 %v7796_v21, %v5525_v20  ;;  %v8017_v21 = vld [vmem:[#allocation3 + $0x630] sm:$0xff] }
  0x86   :  { %4734 = vmatpush.bf16.msrb.mxu2 %v7932_v30  ;;  %v5522_v30 = vor.u32 %v7763_v22, %v5519_v23  ;;  %v8025_v22 = vld [vmem:[#allocation3 + $0x670] sm:$0xff] }
  0x87   :  { %4748 = vmatpush.bf16.msrb.mxu3 %v7940_v31  ;;  %v5530_v31 = vor.u32 %v7764_v24, %v5527_v25  ;;  %v8033_v23 = vld [vmem:[#allocation3 + $0x6b0] sm:$0xff] }
  0x88   :  { %4707 = vmatpush.bf16.msrb.mxu0 %v7915_v32  ;;  %v7985_v32 = vld [vmem:[#allocation3 + $0x530] sm:$0xff] }
  0x89   :  { %4721 = vmatpush.bf16.msrb.mxu1 %v7923_v33  ;;  %v7993_v33 = vld [vmem:[#allocation3 + $0x570] sm:$0xff] }
  0x8a   :  { %4735 = vmatpush.bf16.msrb.mxu2 %v7931_v34  ;;  %v8001_v34 = vld [vmem:[#allocation3 + $0x5b0] sm:$0xff] }
  0x8b   :  { %4749 = vmatpush.bf16.msrb.mxu3 %v7939_v35  ;;  %4708 = vmatmul.bf16.vlgmr.msrb.gmra.mxu0 %v5502_v48  ;;  %v8009_v35 = vld [vmem:[#allocation3 + $0x5f0] sm:$0xff]  ;;  %v7990_v48 = vld [vmem:[#allocation3 + $0x558] sm:$0xff] }
  0x8c   :  { %4756 = vmatpush.bf16.msra.mxu0 %v7954_v36  ;;  %4722 = vmatmul.bf16.vlgmr.msrb.gmra.mxu1 %v5506_v50  ;;  %v7984_v36 = vld [vmem:[#allocation3 + $0x528] sm:$0xff]  ;;  %v8006_v50 = vld [vmem:[#allocation3 + $0x5d8] sm:$0xff]  ;;  %v8041_v24 = vld [vmem:[#allocation3 + $0x6f0] sm:$0xff] }
  0x8d   :  { %4770 = vmatpush.bf16.msra.mxu1 %v7962_v37  ;;  %4736 = vmatmul.bf16.vlgmr.msrb.gmra.mxu2 %v5510_v49  ;;  %v7992_v37 = vld [vmem:[#allocation3 + $0x568] sm:$0xff]  ;;  %v7998_v49 = vld [vmem:[#allocation3 + $0x598] sm:$0xff] }
  0x8e   :  { %4784 = vmatpush.bf16.msra.mxu2 %v7970_v46  ;;  %4750 = vmatmul.bf16.vlgmr.msrb.gmra.mxu3 %v5514_v51 }
  0x8f   :  { %4798 = vmatpush.bf16.msra.mxu3 %v7978_v47  ;;  %v7982_v47 = vld [vmem:[#allocation3 + $0x518] sm:$0xff] }
  0x90   :  { %4757 = vmatpush.bf16.msra.mxu0 %v7953_v52 }
  0x91   :  { %4771 = vmatpush.bf16.msra.mxu1 %v7961_v53 }
  0x92   :  { %4785 = vmatpush.bf16.msra.mxu2 %v7969_v54  ;;  %v7981_v54 = vld [vmem:[#allocation3 + $0x510] sm:$0xff] }
  0x93   :  { %4799 = vmatpush.bf16.msra.mxu3 %v7977_v55  ;;  %v7989_v55 = vld [vmem:[#allocation3 + $0x550] sm:$0xff] }
  0x94   :  { %4758 = vmatpush.bf16.msra.mxu0 %v7952_v56 }
  0x95   :  { %4772 = vmatpush.bf16.msra.mxu1 %v7960_v57  ;;  %v7997_v57 = vld [vmem:[#allocation3 + $0x590] sm:$0xff] }
  0x96   :  { %4786 = vmatpush.bf16.msra.mxu2 %v7968_v58  ;;  %v8005_v58 = vld [vmem:[#allocation3 + $0x5d0] sm:$0xff] }
  0x97   :  { %4800 = vmatpush.bf16.msra.mxu3 %v7976_v59  ;;  %v7980_v59 = vld [vmem:[#allocation3 + $0x508] sm:$0xff] }
  0x98   :  { %4759 = vmatpush.bf16.msra.mxu0 %v7951_v60  ;;  %v7988_v60 = vld [vmem:[#allocation3 + $0x548] sm:$0xff] }
  0x99   :  { %4773 = vmatpush.bf16.msra.mxu1 %v7959_v61  ;;  %v7996_v61 = vld [vmem:[#allocation3 + $0x588] sm:$0xff] }
  0x9a   :  { %4787 = vmatpush.bf16.msra.mxu2 %v7967_v62  ;;  %v8004_v62 = vld [vmem:[#allocation3 + $0x5c8] sm:$0xff] }
  0x9b   :  { %4801 = vmatpush.bf16.msra.mxu3 %v7975_v63  ;;  %v7979_v63 = vld [vmem:[#allocation3 + $0x500] sm:$0xff] }
  0x9c   :  { %4760 = vmatpush.bf16.msra.mxu0 %v7950_v0  ;;  %v7987_v0 = vld [vmem:[#allocation3 + $0x540] sm:$0xff] }
  0x9d   :  { %4774 = vmatpush.bf16.msra.mxu1 %v7958_v1  ;;  %v7995_v1 = vld [vmem:[#allocation3 + $0x580] sm:$0xff] }
  0x9e   :  { %4788 = vmatpush.bf16.msra.mxu2 %v7966_v2  ;;  %v8003_v2 = vld [vmem:[#allocation3 + $0x5c0] sm:$0xff] }
  0x9f   :  { %4802 = vmatpush.bf16.msra.mxu3 %v7974_v3  ;;  %v8018_v3 = vld [vmem:[#allocation3 + $0x638] sm:$0xff] }
  0xa0   :  { %4761 = vmatpush.bf16.msra.mxu0 %v7949_v4  ;;  %v8026_v4 = vld [vmem:[#allocation3 + $0x678] sm:$0xff] }
  0xa1   :  { %4775 = vmatpush.bf16.msra.mxu1 %v7957_v5  ;;  %v5533_v5 = vld [vmem:[%s8880_s0 + $0x50] sm:$0xf] }
  0xa2   :  { %4789 = vmatpush.bf16.msra.mxu2 %v7965_v6  ;;  %v7797_v6 = vld [vmem:[%s8880_s0 + $0x14c] sm:$0xf0] }
  0xa3   :  { %4803 = vmatpush.bf16.msra.mxu3 %v7973_v7  ;;  %v5541_v7 = vld [vmem:[%s8880_s0 + $0x58] sm:$0xf] }
  0xa4   :  { %4762 = vmatpush.bf16.msra.mxu0 %v7948_v8  ;;  %v7798_v8 = vld [vmem:[%s8880_s0 + $0x154] sm:$0xf0] }
  0xa5   :  { %4776 = vmatpush.bf16.msra.mxu1 %v7956_v9  ;;  %v7765_v9 = vld [vmem:[%s8880_s0 + $0x54] sm:$0xf] }
  0xa6   :  { %4790 = vmatpush.bf16.msra.mxu2 %v7964_v10  ;;  %v5535_v10 = vld [vmem:[%s8880_s0 + $0x150] sm:$0xf0] }
  0xa7   :  { %4804 = vmatpush.bf16.msra.mxu3 %v7972_v11  ;;  %v7766_v11 = vld [vmem:[%s8880_s0 + $0x5c] sm:$0xf]  ;;  %v5538_v18 = vor.u32 %v7765_v9, %v5535_v10 }
  0xa8   :  { %4763 = vmatpush.bf16.msra.mxu0 %v7947_v12  ;;  %v4541_v42 = vpop.f32.mrf.mxu0  ;;  %v5543_v12 = vld [vmem:[%s8880_s0 + $0x158] sm:$0xf0] }
  0xa9   :  { %4777 = vmatpush.bf16.msra.mxu1 %v7955_v13  ;;  %v4555_v43 = vpop.f32.mrf.mxu1  ;;  %v8034_v13 = vld [vmem:[#allocation3 + $0x6b8] sm:$0xff]  ;;  %v5546_v19 = vor.u32 %v7766_v11, %v5543_v12 }
  0xaa   :  { %4791 = vmatpush.bf16.msra.mxu2 %v7963_v14  ;;  %v4556_v46 = vadd.f32 %v4555_v43, %v4541_v42  ;;  %v8042_v14 = vld [vmem:[#allocation3 + $0x6f8] sm:$0xff] }
  0xab   :  { %4805 = vmatpush.bf16.msra.mxu3 %v7971_v15  ;;  %4764 = vmatmul.bf16.vlgmr.msra.gmra.mxu0 %v5518_v28  ;;  %v8032_v28 = vld [vmem:[#allocation3 + $0x6a8] sm:$0xff]  ;;  %v8038_v42 = vld [vmem:[#allocation3 + $0x6d8] sm:$0xff] }
  0xac   :  { %4812 = vmatpush.bf16.msrb.mxu0 %v7986_v16  ;;  %4778 = vmatmul.bf16.vlgmr.msra.gmra.mxu1 %v5522_v30  ;;  %v5534_v16 = vor.u32 %v7797_v6, %v5533_v5  ;;  %v8066_v5 = vld [vmem:[#allocation3 + $0x7b8] sm:$0xff] }
  0xad   :  { %4826 = vmatpush.bf16.msrb.mxu1 %v7994_v17  ;;  %4792 = vmatmul.bf16.vlgmr.msra.gmra.mxu2 %v5526_v29  ;;  %v5542_v17 = vor.u32 %v7798_v8, %v5541_v7  ;;  %v8040_v29 = vld [vmem:[#allocation3 + $0x6e8] sm:$0xff]  ;;  %v8074_v6 = vld [vmem:[#allocation3 + $0x7f8] sm:$0xff] }
  0xae   :  { %4840 = vmatpush.bf16.msrb.mxu2 %v8002_v26  ;;  %4806 = vmatmul.bf16.vlgmr.msra.gmra.mxu3 %v5530_v31  ;;  %v8016_v26 = vld [vmem:[#allocation3 + $0x628] sm:$0xff] }
  0xaf   :  { %4854 = vmatpush.bf16.msrb.mxu3 %v8010_v27  ;;  %v8024_v27 = vld [vmem:[#allocation3 + $0x668] sm:$0xff] }
  0xb0   :  { %4813 = vmatpush.bf16.msrb.mxu0 %v7985_v32  ;;  %v4569_v51 = vpop.f32.mrf.mxu2  ;;  %v8564_v15 = vpop.f32.mrf.mxu0 }
  0xb1   :  { %4827 = vmatpush.bf16.msrb.mxu1 %v7993_v33  ;;  %v4570_v52 = vadd.f32 %v4569_v51, %v4556_v46  ;;  %v4583_v53 = vpop.f32.mrf.mxu3  ;;  %v8566_v20 = vpop.f32.mrf.mxu1  ;;  %v8015_v33 = vld [vmem:[#allocation3 + $0x620] sm:$0xff]  ;;  %v8012_v51 = vld [vmem:[#allocation3 + $0x608] sm:$0xff] }
  0xb2   :  { %4841 = vmatpush.bf16.msrb.mxu2 %v8001_v34  ;;  %v8023_v34 = vld [vmem:[#allocation3 + $0x660] sm:$0xff] }
  0xb3   :  { %4855 = vmatpush.bf16.msrb.mxu3 %v8009_v35  ;;  %v8538_v56 = vadd.f32 %v4583_v53, %v4570_v52  ;;  %v8031_v35 = vld [vmem:[#allocation3 + $0x6a0] sm:$0xff]  ;;  %v8020_v52 = vld [vmem:[#allocation3 + $0x648] sm:$0xff] }
  0xb4   :  { %4814 = vmatpush.bf16.msrb.mxu0 %v7984_v36  ;;  %v8039_v36 = vld [vmem:[#allocation3 + $0x6e0] sm:$0xff]  ;;  %v8028_v53 = vld [vmem:[#allocation3 + $0x688] sm:$0xff] }
  0xb5   :  { %4828 = vmatpush.bf16.msrb.mxu1 %v7992_v37 }
  0xb6   :  { %4842 = vmatpush.bf16.msrb.mxu2 %v8000_v38 }
  0xb7   :  { %4856 = vmatpush.bf16.msrb.mxu3 %v8008_v39  ;;  %v8014_v39 = vld [vmem:[#allocation3 + $0x618] sm:$0xff] }
  0xb8   :  { %4815 = vmatpush.bf16.msrb.mxu0 %v7983_v40  ;;  %v8568_v25 = vpop.f32.mrf.mxu2  ;;  %v8022_v40 = vld [vmem:[#allocation3 + $0x658] sm:$0xff] }
  0xb9   :  { %4829 = vmatpush.bf16.msrb.mxu1 %v7991_v41  ;;  %v8570_v30 = vpop.f32.mrf.mxu3  ;;  %v8030_v41 = vld [vmem:[#allocation3 + $0x698] sm:$0xff] }
  0xba   :  { %4843 = vmatpush.bf16.msrb.mxu2 %v7999_v44 }
  0xbb   :  { %4857 = vmatpush.bf16.msrb.mxu3 %v8007_v45 }
  0xbc   :  { %4816 = vmatpush.bf16.msrb.mxu0 %v7982_v47  ;;  %v8013_v47 = vld [vmem:[#allocation3 + $0x610] sm:$0xff] }
  0xbd   :  { %4830 = vmatpush.bf16.msrb.mxu1 %v7990_v48  ;;  %v8021_v48 = vld [vmem:[#allocation3 + $0x650] sm:$0xff] }
  0xbe   :  { %4844 = vmatpush.bf16.msrb.mxu2 %v7998_v49  ;;  %v8029_v49 = vld [vmem:[#allocation3 + $0x690] sm:$0xff] }
  0xbf   :  { %4858 = vmatpush.bf16.msrb.mxu3 %v8006_v50  ;;  %v8037_v50 = vld [vmem:[#allocation3 + $0x6d0] sm:$0xff] }
  0xc0   :  { %4817 = vmatpush.bf16.msrb.mxu0 %v7981_v54  ;;  %v8036_v54 = vld [vmem:[#allocation3 + $0x6c8] sm:$0xff] }
  0xc1   :  { %4831 = vmatpush.bf16.msrb.mxu1 %v7989_v55  ;;  %v8011_v55 = vld [vmem:[#allocation3 + $0x600] sm:$0xff] }
  0xc2   :  { %4845 = vmatpush.bf16.msrb.mxu2 %v7997_v57  ;;  %v8027_v57 = vld [vmem:[#allocation3 + $0x680] sm:$0xff] }
  0xc3   :  { %4859 = vmatpush.bf16.msrb.mxu3 %v8005_v58  ;;  %v8035_v58 = vld [vmem:[#allocation3 + $0x6c0] sm:$0xff] }
  0xc4   :  { %4818 = vmatpush.bf16.msrb.mxu0 %v7980_v59  ;;  %v8050_v59 = vld [vmem:[#allocation3 + $0x738] sm:$0xff] }
  0xc5   :  { %4832 = vmatpush.bf16.msrb.mxu1 %v7988_v60  ;;  %v8058_v60 = vld [vmem:[#allocation3 + $0x778] sm:$0xff] }
  0xc6   :  { %4846 = vmatpush.bf16.msrb.mxu2 %v7996_v61  ;;  %v5549_v61 = vld [vmem:[%s8880_s0 + $0x60] sm:$0xf] }
  0xc7   :  { %4860 = vmatpush.bf16.msrb.mxu3 %v8004_v62  ;;  %v7799_v62 = vld [vmem:[%s8880_s0 + $0x15c] sm:$0xf0] }
  0xc8   :  { %4819 = vmatpush.bf16.msrb.mxu0 %v7979_v63  ;;  %v4597_v31 = vpop.f32.mrf.mxu0  ;;  %v5557_v63 = vld [vmem:[%s8880_s0 + $0x68] sm:$0xf]  ;;  %v5550_v7 = vor.u32 %v7799_v62, %v5549_v61  ;;  %v7769_v61 = vld [vmem:[%s8880_s0 + $0x74] sm:$0xf] }
  0xc9   :  { %4833 = vmatpush.bf16.msrb.mxu1 %v7987_v0  ;;  %v4598_v32 = vadd.f32 %v4597_v31, %v8538_v56  ;;  %v4611_v37 = vpop.f32.mrf.mxu1  ;;  %v8019_v56 = vld [vmem:[#allocation3 + $0x640] sm:$0xff]  ;;  %v7800_v0 = vld [vmem:[%s8880_s0 + $0x164] sm:$0xf0]  ;;  %v5567_v62 = vld [vmem:[%s8880_s0 + $0x170] sm:$0xf0] }
  0xca   :  { %4847 = vmatpush.bf16.msrb.mxu2 %v7995_v1  ;;  %v7767_v1 = vld [vmem:[%s8880_s0 + $0x64] sm:$0xf]  ;;  %v5558_v8 = vor.u32 %v7800_v0, %v5557_v63  ;;  %v7770_v63 = vld [vmem:[%s8880_s0 + $0x7c] sm:$0xf] }
  0xcb   :  { %4861 = vmatpush.bf16.msrb.mxu3 %v8003_v2  ;;  %4820 = vmatmul.bf16.vlgmr.msrb.gmra.mxu0 %v5534_v16  ;;  %v4612_v38 = vadd.f32 %v4611_v37, %v4598_v32  ;;  %v5551_v2 = vld [vmem:[%s8880_s0 + $0x160] sm:$0xf0]  ;;  %v8065_v16 = vld [vmem:[#allocation3 + $0x7b0] sm:$0xff]  ;;  %v8062_v37 = vld [vmem:[#allocation3 + $0x798] sm:$0xff] }
  0xcc   :  { %4868 = vmatpush.bf16.msra.mxu0 %v8018_v3  ;;  %4834 = vmatmul.bf16.vlgmr.msrb.gmra.mxu1 %v5538_v18  ;;  %v7768_v3 = vld [vmem:[%s8880_s0 + $0x6c] sm:$0xf]  ;;  %v5554_v10 = vor.u32 %v7767_v1, %v5551_v2  ;;  %v8063_v32 = vld [vmem:[#allocation3 + $0x7a0] sm:$0xff]  ;;  %v5575_v0 = vld [vmem:[%s8880_s0 + $0x178] sm:$0xf0] }
  0xcd   :  { %4882 = vmatpush.bf16.msra.mxu1 %v8026_v4  ;;  %4848 = vmatmul.bf16.vlgmr.msrb.gmra.mxu2 %v5542_v17  ;;  %v5559_v4 = vld [vmem:[%s8880_s0 + $0x168] sm:$0xf0]  ;;  %v8073_v17 = vld [vmem:[#allocation3 + $0x7f0] sm:$0xff]  ;;  %v8098_v1 = vld [vmem:[#allocation3 + $0x8b8] sm:$0xff] }
  0xce   :  { %4896 = vmatpush.bf16.msra.mxu2 %v8034_v13  ;;  %4862 = vmatmul.bf16.vlgmr.msrb.gmra.mxu3 %v5546_v19  ;;  %v5562_v11 = vor.u32 %v7768_v3, %v5559_v4  ;;  %v8049_v13 = vld [vmem:[#allocation3 + $0x730] sm:$0xff]  ;;  %v8048_v18 = vld [vmem:[#allocation3 + $0x728] sm:$0xff]  ;;  %v8106_v2 = vld [vmem:[#allocation3 + $0x8f8] sm:$0xff] }
  0xcf   :  { %4910 = vmatpush.bf16.msra.mxu3 %v8042_v14  ;;  %v8057_v14 = vld [vmem:[#allocation3 + $0x770] sm:$0xff]  ;;  %v8056_v19 = vld [vmem:[#allocation3 + $0x768] sm:$0xff] }
  0xd0   :  { %4869 = vmatpush.bf16.msra.mxu0 %v8017_v21  ;;  %v4625_v43 = vpop.f32.mrf.mxu2  ;;  %v8599_v9 = vpop.f32.mrf.mxu0 }
  0xd1   :  { %4883 = vmatpush.bf16.msra.mxu1 %v8025_v22  ;;  %v4626_v44 = vadd.f32 %v4625_v43, %v4612_v38  ;;  %v4639_v45 = vpop.f32.mrf.mxu3  ;;  %v8601_v12 = vpop.f32.mrf.mxu1  ;;  %v8064_v22 = vld [vmem:[#allocation3 + $0x7a8] sm:$0xff]  ;;  %v8070_v38 = vld [vmem:[#allocation3 + $0x7d8] sm:$0xff]  ;;  %v8045_v43 = vld [vmem:[#allocation3 + $0x710] sm:$0xff] }
  0xd2   :  { %4897 = vmatpush.bf16.msra.mxu2 %v8033_v23  ;;  %v8072_v23 = vld [vmem:[#allocation3 + $0x7e8] sm:$0xff] }
  0xd3   :  { %4911 = vmatpush.bf16.msra.mxu3 %v8041_v24  ;;  %v8573_v46 = vadd.f32 %v4639_v45, %v4626_v44  ;;  %v8053_v44 = vld [vmem:[#allocation3 + $0x750] sm:$0xff] }
  0xd4   :  { %4870 = vmatpush.bf16.msra.mxu0 %v8016_v26  ;;  %v8061_v45 = vld [vmem:[#allocation3 + $0x790] sm:$0xff] }
  0xd5   :  { %4884 = vmatpush.bf16.msra.mxu1 %v8024_v27 }
  0xd6   :  { %4898 = vmatpush.bf16.msra.mxu2 %v8032_v28  ;;  %v8047_v28 = vld [vmem:[#allocation3 + $0x720] sm:$0xff] }
  0xd7   :  { %4912 = vmatpush.bf16.msra.mxu3 %v8040_v29  ;;  %v8055_v29 = vld [vmem:[#allocation3 + $0x760] sm:$0xff] }
  0xd8   :  { %4871 = vmatpush.bf16.msra.mxu0 %v8015_v33  ;;  %v8603_v21 = vpop.f32.mrf.mxu2  ;;  %v8071_v33 = vld [vmem:[#allocation3 + $0x7e0] sm:$0xff] }
  0xd9   :  { %4885 = vmatpush.bf16.msra.mxu1 %v8023_v34  ;;  %v8605_v24 = vpop.f32.mrf.mxu3 }
  0xda   :  { %4899 = vmatpush.bf16.msra.mxu2 %v8031_v35  ;;  %v8046_v35 = vld [vmem:[#allocation3 + $0x718] sm:$0xff] }
  0xdb   :  { %4913 = vmatpush.bf16.msra.mxu3 %v8039_v36  ;;  %v8054_v36 = vld [vmem:[#allocation3 + $0x758] sm:$0xff] }
  0xdc   :  { %4872 = vmatpush.bf16.msra.mxu0 %v8014_v39 }
  0xdd   :  { %4886 = vmatpush.bf16.msra.mxu1 %v8022_v40 }
  0xde   :  { %4900 = vmatpush.bf16.msra.mxu2 %v8030_v41 }
  0xdf   :  { %4914 = vmatpush.bf16.msra.mxu3 %v8038_v42 }
  0xe0   :  { %4873 = vmatpush.bf16.msra.mxu0 %v8013_v47  ;;  %v8044_v47 = vld [vmem:[#allocation3 + $0x708] sm:$0xff] }
  0xe1   :  { %4887 = vmatpush.bf16.msra.mxu1 %v8021_v48  ;;  %v8052_v48 = vld [vmem:[#allocation3 + $0x748] sm:$0xff] }
  0xe2   :  { %4901 = vmatpush.bf16.msra.mxu2 %v8029_v49  ;;  %v8060_v49 = vld [vmem:[#allocation3 + $0x788] sm:$0xff] }
  0xe3   :  { %4915 = vmatpush.bf16.msra.mxu3 %v8037_v50  ;;  %v8068_v50 = vld [vmem:[#allocation3 + $0x7c8] sm:$0xff] }
  0xe4   :  { %4874 = vmatpush.bf16.msra.mxu0 %v8012_v51  ;;  %v8043_v51 = vld [vmem:[#allocation3 + $0x700] sm:$0xff] }
  0xe5   :  { %4888 = vmatpush.bf16.msra.mxu1 %v8020_v52  ;;  %v8051_v52 = vld [vmem:[#allocation3 + $0x740] sm:$0xff] }
  0xe6   :  { %4902 = vmatpush.bf16.msra.mxu2 %v8028_v53  ;;  %v8059_v53 = vld [vmem:[#allocation3 + $0x780] sm:$0xff] }
  0xe7   :  { %4916 = vmatpush.bf16.msra.mxu3 %v8036_v54  ;;  %v8067_v54 = vld [vmem:[#allocation3 + $0x7c0] sm:$0xff] }
  0xe8   :  { %4875 = vmatpush.bf16.msra.mxu0 %v8011_v55  ;;  %v4653_v26 = vpop.f32.mrf.mxu0  ;;  %v8082_v55 = vld [vmem:[#allocation3 + $0x838] sm:$0xff] }
  0xe9   :  { %4889 = vmatpush.bf16.msra.mxu1 %v8019_v56  ;;  %v4654_v27 = vadd.f32 %v4653_v26, %v8573_v46  ;;  %v4667_v31 = vpop.f32.mrf.mxu1  ;;  %v8069_v46 = vld [vmem:[#allocation3 + $0x7d0] sm:$0xff]  ;;  %v8090_v56 = vld [vmem:[#allocation3 + $0x878] sm:$0xff] }
  0xea   :  { %4903 = vmatpush.bf16.msra.mxu2 %v8027_v57  ;;  %v5565_v57 = vld [vmem:[%s8880_s0 + $0x70] sm:$0xf] }
  0xeb   :  { %4917 = vmatpush.bf16.msra.mxu3 %v8035_v58  ;;  %4876 = vmatmul.bf16.vlgmr.msra.gmra.mxu0 %v5550_v7  ;;  %v4668_v34 = vadd.f32 %v4667_v31, %v4654_v27  ;;  %v7801_v58 = vld [vmem:[%s8880_s0 + $0x16c] sm:$0xf0]  ;;  %v5578_v7 = vor.u32 %v7770_v63, %v5575_v0  ;;  %v5583_v63 = vld [vmem:[%s8880_s0 + $0x180] sm:$0xf0]  ;;  %v7772_v0 = vld [vmem:[%s8880_s0 + $0x8c] sm:$0xf] }
  0xec   :  { %4924 = vmatpush.bf16.msrb.mxu0 %v8050_v59  ;;  %4890 = vmatmul.bf16.vlgmr.msra.gmra.mxu1 %v5554_v10  ;;  %v5573_v59 = vld [vmem:[%s8880_s0 + $0x78] sm:$0xf]  ;;  %v5566_v3 = vor.u32 %v7801_v58, %v5565_v57  ;;  %v7803_v58 = vld [vmem:[%s8880_s0 + $0x17c] sm:$0xf0] }
  0xed   :  { %4938 = vmatpush.bf16.msrb.mxu1 %v8058_v60  ;;  %4904 = vmatmul.bf16.vlgmr.msra.gmra.mxu2 %v5558_v8  ;;  %v7802_v60 = vld [vmem:[%s8880_s0 + $0x174] sm:$0xf0]  ;;  %v4558_v8 = vadd.f32 %v8566_v20, %v8564_v15  ;;  %v8088_v15 = vld [vmem:[#allocation3 + $0x868] sm:$0xff] }
  0xee   :  { %4952 = vmatpush.bf16.msrb.mxu2 %v8066_v5  ;;  %4918 = vmatmul.bf16.vlgmr.msra.gmra.mxu3 %v5562_v11  ;;  %v5574_v4 = vor.u32 %v7802_v60, %v5573_v59  ;;  %v8081_v11 = vld [vmem:[#allocation3 + $0x830] sm:$0xff]  ;;  %v8122_v57 = vld [vmem:[#allocation3 + $0x978] sm:$0xff]  ;;  %v5589_v59 = vld [vmem:[%s8880_s0 + $0x88] sm:$0xf] }
  0xef   :  { %4966 = vmatpush.bf16.msrb.mxu3 %v8074_v6  ;;  %v5570_v6 = vor.u32 %v7769_v61, %v5567_v62  ;;  %v7804_v60 = vld [vmem:[%s8880_s0 + $0x184] sm:$0xf0]  ;;  %v7771_v61 = vld [vmem:[%s8880_s0 + $0x84] sm:$0xf] }
  0xf0   :  { %4925 = vmatpush.bf16.msrb.mxu0 %v8049_v13  ;;  %v4681_v39 = vpop.f32.mrf.mxu2  ;;  %v8634_v5 = vpop.f32.mrf.mxu0  ;;  %v8089_v13 = vld [vmem:[#allocation3 + $0x870] sm:$0xff] }
  0xf1   :  { %4939 = vmatpush.bf16.msrb.mxu1 %v8057_v14  ;;  %v4682_v40 = vadd.f32 %v4681_v39, %v4668_v34  ;;  %v4695_v41 = vpop.f32.mrf.mxu3  ;;  %v8638_v10 = vpop.f32.mrf.mxu1  ;;  %v8097_v14 = vld [vmem:[#allocation3 + $0x8b0] sm:$0xff] }
  0xf2   :  { %4953 = vmatpush.bf16.msrb.mxu2 %v8065_v16  ;;  %v8105_v16 = vld [vmem:[#allocation3 + $0x8f0] sm:$0xff] }
  0xf3   :  { %4967 = vmatpush.bf16.msrb.mxu3 %v8073_v17  ;;  %v8608_v42 = vadd.f32 %v4695_v41, %v4682_v40  ;;  %v4572_v17 = vadd.f32 %v8568_v25, %v4558_v8  ;;  %v8079_v25 = vld [vmem:[#allocation3 + $0x820] sm:$0xff]  ;;  %v5586_v8 = vor.u32 %v7771_v61, %v5583_v63  ;;  %v8154_v63 = vld [vmem:[#allocation3 + $0xa78] sm:$0xff] }
  0xf4   :  { %4926 = vmatpush.bf16.msrb.mxu0 %v8048_v18  ;;  %v8080_v18 = vld [vmem:[#allocation3 + $0x828] sm:$0xff] }
  0xf5   :  { %4940 = vmatpush.bf16.msrb.mxu1 %v8056_v19  ;;  %v8096_v19 = vld [vmem:[#allocation3 + $0x8a8] sm:$0xff]  ;;  %v4586_v27 = vadd.f32 %v8570_v30, %v4572_v17  ;;  %v8094_v30 = vld [vmem:[#allocation3 + $0x898] sm:$0xff]  ;;  %v8137_v17 = vld [vmem:[#allocation3 + $0x9f0] sm:$0xff] }
  0xf6   :  { %4954 = vmatpush.bf16.msrb.mxu2 %v8064_v22  ;;  %v8104_v22 = vld [vmem:[#allocation3 + $0x8e8] sm:$0xff] }
  0xf7   :  { %4968 = vmatpush.bf16.msrb.mxu3 %v8072_v23  ;;  %v4600_v34 = vadd.f32 %v8599_v9, %v4586_v27  ;;  %v8077_v9 = vld [vmem:[#allocation3 + $0x810] sm:$0xff]  ;;  %v8136_v27 = vld [vmem:[#allocation3 + $0x9e8] sm:$0xff] }
  0xf8   :  { %4927 = vmatpush.bf16.msrb.mxu0 %v8047_v28  ;;  %v8641_v20 = vpop.f32.mrf.mxu2 }
  0xf9   :  { %4941 = vmatpush.bf16.msrb.mxu1 %v8055_v29  ;;  %v8643_v23 = vpop.f32.mrf.mxu3  ;;  %v8087_v29 = vld [vmem:[#allocation3 + $0x860] sm:$0xff]  ;;  %v4614_v40 = vadd.f32 %v8601_v12, %v4600_v34  ;;  %v8084_v12 = vld [vmem:[#allocation3 + $0x848] sm:$0xff] }
  0xfa   :  { %4955 = vmatpush.bf16.msrb.mxu2 %v8063_v32  ;;  %v8095_v32 = vld [vmem:[#allocation3 + $0x8a0] sm:$0xff] }
  0xfb   :  { %4969 = vmatpush.bf16.msrb.mxu3 %v8071_v33  ;;  %v8103_v33 = vld [vmem:[#allocation3 + $0x8e0] sm:$0xff] }
  0xfc   :  { %4928 = vmatpush.bf16.msrb.mxu0 %v8046_v35  ;;  %v8127_v34 = vld [vmem:[#allocation3 + $0x9a0] sm:$0xff] }
  0xfd   :  { %4942 = vmatpush.bf16.msrb.mxu1 %v8054_v36  ;;  %v8078_v36 = vld [vmem:[#allocation3 + $0x818] sm:$0xff] }
  0xfe   :  { %4956 = vmatpush.bf16.msrb.mxu2 %v8062_v37  ;;  %v8086_v37 = vld [vmem:[#allocation3 + $0x858] sm:$0xff] }
  0xff   :  { %4970 = vmatpush.bf16.msrb.mxu3 %v8070_v38  ;;  %v8102_v38 = vld [vmem:[#allocation3 + $0x8d8] sm:$0xff] }
 0x100   :  { %4929 = vmatpush.bf16.msrb.mxu0 %v8045_v43  ;;  %v4628_v43 = vadd.f32 %v8603_v21, %v4614_v40  ;;  %v8100_v21 = vld [vmem:[#allocation3 + $0x8c8] sm:$0xff]  ;;  %v8134_v40 = vld [vmem:[#allocation3 + $0x9d8] sm:$0xff] }
 0x101   :  { %4943 = vmatpush.bf16.msrb.mxu1 %v8053_v44 }
 0x102   :  { %4957 = vmatpush.bf16.msrb.mxu2 %v8061_v45  ;;  %v8085_v45 = vld [vmem:[#allocation3 + $0x850] sm:$0xff] }
 0x103   :  { %4971 = vmatpush.bf16.msrb.mxu3 %v8069_v46  ;;  %v8093_v46 = vld [vmem:[#allocation3 + $0x890] sm:$0xff] }
 0x104   :  { %4930 = vmatpush.bf16.msrb.mxu0 %v8044_v47  ;;  %v8101_v47 = vld [vmem:[#allocation3 + $0x8d0] sm:$0xff] }
 0x105   :  { %4944 = vmatpush.bf16.msrb.mxu1 %v8052_v48  ;;  %v4642_v48 = vadd.f32 %v8605_v24, %v4628_v43  ;;  %v5581_v24 = vld [vmem:[%s8880_s0 + $0x80] sm:$0xf] }
 0x106   :  { %4958 = vmatpush.bf16.msrb.mxu2 %v8060_v49  ;;  %v8076_v49 = vld [vmem:[#allocation3 + $0x808] sm:$0xff] }
 0x107   :  { %4972 = vmatpush.bf16.msrb.mxu3 %v8068_v50  ;;  %v8092_v50 = vld [vmem:[#allocation3 + $0x888] sm:$0xff] }
 0x108   :  { %4931 = vmatpush.bf16.msrb.mxu0 %v8043_v51  ;;  %v4709_v26 = vpop.f32.mrf.mxu0  ;;  %v4656_v51 = vadd.f32 %v8634_v5, %v4642_v48  ;;  %v5582_v5 = vor.u32 %v7803_v58, %v5581_v24  ;;  %v8117_v48 = vld [vmem:[#allocation3 + $0x950] sm:$0xff]  ;;  %v8107_v24 = vld [vmem:[#allocation3 + $0x900] sm:$0xff] }
 0x109   :  { %4945 = vmatpush.bf16.msrb.mxu1 %v8051_v52  ;;  %v4710_v28 = vadd.f32 %v4709_v26, %v8608_v42  ;;  %v4723_v31 = vpop.f32.mrf.mxu1  ;;  %v8075_v52 = vld [vmem:[#allocation3 + $0x800] sm:$0xff]  ;;  %v8128_v26 = vld [vmem:[#allocation3 + $0x9a8] sm:$0xff] }
 0x10a   :  { %4959 = vmatpush.bf16.msrb.mxu2 %v8059_v53  ;;  %v8083_v53 = vld [vmem:[#allocation3 + $0x840] sm:$0xff]  ;;  %v4670_v62 = vadd.f32 %v8638_v10, %v4656_v51  ;;  %v8108_v51 = vld [vmem:[#allocation3 + $0x908] sm:$0xff] }
 0x10b   :  { %4973 = vmatpush.bf16.msrb.mxu3 %v8067_v54  ;;  %4932 = vmatmul.bf16.vlgmr.msrb.gmra.mxu0 %v5566_v3  ;;  %v4724_v35 = vadd.f32 %v4723_v31, %v4710_v28  ;;  %v8091_v54 = vld [vmem:[#allocation3 + $0x880] sm:$0xff]  ;;  %v8138_v3 = vld [vmem:[#allocation3 + $0x9f8] sm:$0xff] }
 0x10c   :  { %4980 = vmatpush.bf16.msra.mxu0 %v8082_v55  ;;  %4946 = vmatmul.bf16.vlgmr.msrb.gmra.mxu1 %v5570_v6  ;;  %v8099_v55 = vld [vmem:[#allocation3 + $0x8c0] sm:$0xff]  ;;  %v5590_v6 = vor.u32 %v7804_v60, %v5589_v59 }
 0x10d   :  { %4994 = vmatpush.bf16.msra.mxu1 %v8090_v56  ;;  %4960 = vmatmul.bf16.vlgmr.msrb.gmra.mxu2 %v5574_v4  ;;  %v8114_v56 = vld [vmem:[#allocation3 + $0x938] sm:$0xff]  ;;  %v4684_v4 = vadd.f32 %v8641_v20, %v4670_v62  ;;  %v8112_v20 = vld [vmem:[#allocation3 + $0x928] sm:$0xff]  ;;  %v8111_v31 = vld [vmem:[#allocation3 + $0x920] sm:$0xff] }
 0x10e   :  { %5008 = vmatpush.bf16.msra.mxu2 %v8098_v1  ;;  %4974 = vmatmul.bf16.vlgmr.msrb.gmra.mxu3 %v5578_v7  ;;  %v5591_v1 = vld [vmem:[%s8880_s0 + $0x188] sm:$0xf0]  ;;  %v8115_v58 = vld [vmem:[#allocation3 + $0x940] sm:$0xff]  ;;  %v8146_v62 = vld [vmem:[#allocation3 + $0xa38] sm:$0xff] }
 0x10f   :  { %5022 = vmatpush.bf16.msra.mxu3 %v8106_v2  ;;  %v8130_v2 = vld [vmem:[#allocation3 + $0x9b8] sm:$0xff]  ;;  %v5594_v10 = vor.u32 %v7772_v0, %v5591_v1  ;;  %v8123_v59 = vld [vmem:[#allocation3 + $0x980] sm:$0xff]  ;;  %v5597_v0 = vld [vmem:[%s8880_s0 + $0x90] sm:$0xf] }
 0x110   :  { %4981 = vmatpush.bf16.msra.mxu0 %v8081_v11  ;;  %v4737_v39 = vpop.f32.mrf.mxu2  ;;  %v4711_v7 = vpop.f32.mrf.mxu0  ;;  %v8131_v60 = vld [vmem:[#allocation3 + $0x9c0] sm:$0xff]  ;;  %v7805_v1 = vld [vmem:[%s8880_s0 + $0x18c] sm:$0xf0] }
 0x111   :  { %4995 = vmatpush.bf16.msra.mxu1 %v8089_v13  ;;  %v4738_v41 = vadd.f32 %v4737_v39, %v4724_v35  ;;  %v4751_v42 = vpop.f32.mrf.mxu3  ;;  %v4725_v11 = vpop.f32.mrf.mxu1  ;;  %v8113_v13 = vld [vmem:[#allocation3 + $0x930] sm:$0xff]  ;;  %v8135_v35 = vld [vmem:[#allocation3 + $0x9e0] sm:$0xff]  ;;  %v8126_v39 = vld [vmem:[#allocation3 + $0x998] sm:$0xff] }
 0x112   :  { %5009 = vmatpush.bf16.msra.mxu2 %v8097_v14  ;;  %v8121_v14 = vld [vmem:[#allocation3 + $0x970] sm:$0xff] }
 0x113   :  { %5023 = vmatpush.bf16.msra.mxu3 %v8105_v16  ;;  %v8650_v44 = vadd.f32 %v4751_v42, %v4738_v41  ;;  %v8129_v16 = vld [vmem:[#allocation3 + $0x9b0] sm:$0xff] }
 0x114   :  { %4982 = vmatpush.bf16.msra.mxu0 %v8080_v18  ;;  %v4698_v18 = vadd.f32 %v8643_v23, %v4684_v4  ;;  %v7773_v4 = vld [vmem:[%s8880_s0 + $0x94] sm:$0xf] }
 0x115   :  { %4996 = vmatpush.bf16.msra.mxu1 %v8088_v15 }
 0x116   :  { %5010 = vmatpush.bf16.msra.mxu2 %v8096_v19  ;;  %v4712_v15 = vadd.f32 %v4711_v7, %v4698_v18  ;;  %v8120_v19 = vld [vmem:[#allocation3 + $0x968] sm:$0xff]  ;;  %v5607_v7 = vld [vmem:[%s8880_s0 + $0x198] sm:$0xf0]  ;;  %v8153_v18 = vld [vmem:[#allocation3 + $0xa70] sm:$0xff] }
 0x117   :  { %5024 = vmatpush.bf16.msra.mxu3 %v8104_v22 }
 0x118   :  { %4983 = vmatpush.bf16.msra.mxu0 %v8079_v25  ;;  %v4739_v22 = vpop.f32.mrf.mxu2 }
 0x119   :  { %4997 = vmatpush.bf16.msra.mxu1 %v8087_v29  ;;  %v4753_v28 = vpop.f32.mrf.mxu3  ;;  %v4726_v29 = vadd.f32 %v4725_v11, %v4712_v15  ;;  %v5598_v11 = vor.u32 %v7805_v1, %v5597_v0  ;;  %v8161_v15 = vld [vmem:[#allocation3 + $0xab0] sm:$0xff]  ;;  %v7775_v0 = vld [vmem:[%s8880_s0 + $0xa4] sm:$0xf] }
 0x11a   :  { %5011 = vmatpush.bf16.msra.mxu2 %v8095_v32  ;;  %v8119_v32 = vld [vmem:[#allocation3 + $0x960] sm:$0xff] }
 0x11b   :  { %5025 = vmatpush.bf16.msra.mxu3 %v8103_v33  ;;  %v5615_v1 = vld [vmem:[%s8880_s0 + $0x1a0] sm:$0xf0] }
 0x11c   :  { %4984 = vmatpush.bf16.msra.mxu0 %v8078_v36  ;;  %v4740_v36 = vadd.f32 %v4739_v22, %v4726_v29  ;;  %v8152_v22 = vld [vmem:[#allocation3 + $0xa68] sm:$0xff]  ;;  %v8143_v29 = vld [vmem:[#allocation3 + $0xa20] sm:$0xff] }
 0x11d   :  { %4998 = vmatpush.bf16.msra.mxu1 %v8086_v37 }
 0x11e   :  { %5012 = vmatpush.bf16.msra.mxu2 %v8094_v30  ;;  %v8110_v30 = vld [vmem:[#allocation3 + $0x918] sm:$0xff]  ;;  %v4754_v42 = vadd.f32 %v4753_v28, %v4740_v36 }
 0x11f   :  { %5026 = vmatpush.bf16.msra.mxu3 %v8102_v38  ;;  %v8118_v38 = vld [vmem:[#allocation3 + $0x958] sm:$0xff] }
 0x120   :  { %4985 = vmatpush.bf16.msra.mxu0 %v8077_v9  ;;  %v8150_v36 = vld [vmem:[#allocation3 + $0xa58] sm:$0xff] }
 0x121   :  { %4999 = vmatpush.bf16.msra.mxu1 %v8085_v45 }
 0x122   :  { %5013 = vmatpush.bf16.msra.mxu2 %v8093_v46 }
 0x123   :  { %5027 = vmatpush.bf16.msra.mxu3 %v8101_v47  ;;  %v8109_v47 = vld [vmem:[#allocation3 + $0x910] sm:$0xff] }
 0x124   :  { %4986 = vmatpush.bf16.msra.mxu0 %v8076_v49 }
 0x125   :  { %5000 = vmatpush.bf16.msra.mxu1 %v8084_v12  ;;  %v8125_v12 = vld [vmem:[#allocation3 + $0x990] sm:$0xff] }
 0x126   :  { %5014 = vmatpush.bf16.msra.mxu2 %v8092_v50  ;;  %v8133_v50 = vld [vmem:[#allocation3 + $0x9d0] sm:$0xff] }
 0x127   :  { %5028 = vmatpush.bf16.msra.mxu3 %v8100_v21 }
 0x128   :  { %4987 = vmatpush.bf16.msra.mxu0 %v8075_v52  ;;  %v4765_v25 = vpop.f32.mrf.mxu0  ;;  %v8116_v52 = vld [vmem:[#allocation3 + $0x948] sm:$0xff] }
 0x129   :  { %5001 = vmatpush.bf16.msra.mxu1 %v8083_v53  ;;  %v4766_v23 = vadd.f32 %v4765_v25, %v8650_v44  ;;  %v4779_v33 = vpop.f32.mrf.mxu1  ;;  %v8124_v53 = vld [vmem:[#allocation3 + $0x988] sm:$0xff] }
 0x12a   :  { %5015 = vmatpush.bf16.msra.mxu2 %v8091_v54  ;;  %v8132_v54 = vld [vmem:[#allocation3 + $0x9c8] sm:$0xff] }
 0x12b   :  { %5029 = vmatpush.bf16.msra.mxu3 %v8099_v55  ;;  %4988 = vmatmul.bf16.vlgmr.msra.gmra.mxu0 %v5582_v5  ;;  %v4780_v37 = vadd.f32 %v4779_v33, %v4766_v23  ;;  %v5599_v5 = vld [vmem:[%s8880_s0 + $0x190] sm:$0xf0]  ;;  %v8151_v23 = vld [vmem:[#allocation3 + $0xa60] sm:$0xff] }
 0x12c   :  { %5036 = vmatpush.bf16.msrb.mxu0 %v8114_v56  ;;  %5002 = vmatmul.bf16.vlgmr.msra.gmra.mxu1 %v5586_v8  ;;  %v8162_v8 = vld [vmem:[#allocation3 + $0xab8] sm:$0xff]  ;;  %v8167_v33 = vld [vmem:[#allocation3 + $0xae0] sm:$0xff] }
 0x12d   :  { %5050 = vmatpush.bf16.msrb.mxu1 %v8122_v57  ;;  %5016 = vmatmul.bf16.vlgmr.msra.gmra.mxu2 %v5590_v6  ;;  %v7774_v6 = vld [vmem:[%s8880_s0 + $0x9c] sm:$0xf] }
 0x12e   :  { %5064 = vmatpush.bf16.msrb.mxu2 %v8130_v2  ;;  %5030 = vmatmul.bf16.vlgmr.msra.gmra.mxu3 %v5594_v10  ;;  %v5605_v2 = vld [vmem:[%s8880_s0 + $0x98] sm:$0xf] }
 0x12f   :  { %5078 = vmatpush.bf16.msrb.mxu3 %v8138_v3  ;;  %v7806_v3 = vld [vmem:[%s8880_s0 + $0x194] sm:$0xf0] }
 0x130   :  { %5037 = vmatpush.bf16.msrb.mxu0 %v8113_v13  ;;  %v4793_v41 = vpop.f32.mrf.mxu2  ;;  %v4767_v9 = vpop.f32.mrf.mxu0  ;;  %v8170_v10 = vld [vmem:[#allocation3 + $0xaf8] sm:$0xff]  ;;  %v5606_v13 = vor.u32 %v7806_v3, %v5605_v2  ;;  %v7776_v2 = vld [vmem:[%s8880_s0 + $0xac] sm:$0xf] }
 0x131   :  { %5051 = vmatpush.bf16.msrb.mxu1 %v8121_v14  ;;  %v4794_v43 = vadd.f32 %v4793_v41, %v4780_v37  ;;  %v4807_v44 = vpop.f32.mrf.mxu3  ;;  %v4768_v45 = vadd.f32 %v4767_v9, %v4754_v42  ;;  %v4781_v49 = vpop.f32.mrf.mxu1  ;;  %v5602_v14 = vor.u32 %v7773_v4, %v5599_v5  ;;  %v8158_v37 = vld [vmem:[#allocation3 + $0xa98] sm:$0xff]  ;;  %v8149_v9 = vld [vmem:[#allocation3 + $0xa50] sm:$0xff]  ;;  %v5623_v3 = vld [vmem:[%s8880_s0 + $0x1a8] sm:$0xf0] }
 0x132   :  { %5065 = vmatpush.bf16.msrb.mxu2 %v8129_v16  ;;  %v5610_v16 = vor.u32 %v7774_v6, %v5607_v7  ;;  %v8194_v4 = vld [vmem:[#allocation3 + $0xbb8] sm:$0xff] }
 0x133   :  { %5079 = vmatpush.bf16.msrb.mxu3 %v8137_v17  ;;  %v8682_v46 = vadd.f32 %v4807_v44, %v4794_v43  ;;  %v4782_v21 = vadd.f32 %v4781_v49, %v4768_v45  ;;  %v8145_v17 = vld [vmem:[#allocation3 + $0xa30] sm:$0xff]  ;;  %v8140_v49 = vld [vmem:[#allocation3 + $0xa08] sm:$0xff]  ;;  %v8202_v5 = vld [vmem:[#allocation3 + $0xbf8] sm:$0xff] }
 0x134   :  { %5038 = vmatpush.bf16.msrb.mxu0 %v8112_v20  ;;  %v8169_v20 = vld [vmem:[#allocation3 + $0xaf0] sm:$0xff] }
 0x135   :  { %5052 = vmatpush.bf16.msrb.mxu1 %v8120_v19  ;;  %v8144_v19 = vld [vmem:[#allocation3 + $0xa28] sm:$0xff]  ;;  %v8141_v44 = vld [vmem:[#allocation3 + $0xa10] sm:$0xff] }
 0x136   :  { %5066 = vmatpush.bf16.msrb.mxu2 %v8128_v26  ;;  %v8160_v26 = vld [vmem:[#allocation3 + $0xaa8] sm:$0xff] }
 0x137   :  { %5080 = vmatpush.bf16.msrb.mxu3 %v8136_v27  ;;  %v8168_v27 = vld [vmem:[#allocation3 + $0xae8] sm:$0xff] }
 0x138   :  { %5039 = vmatpush.bf16.msrb.mxu0 %v8111_v31  ;;  %v4795_v55 = vpop.f32.mrf.mxu2 }
 0x139   :  { %5053 = vmatpush.bf16.msrb.mxu1 %v8119_v32  ;;  %v4796_v56 = vadd.f32 %v4795_v55, %v4782_v21  ;;  %v4809_v57 = vpop.f32.mrf.mxu3  ;;  %v8159_v32 = vld [vmem:[#allocation3 + $0xaa0] sm:$0xff]  ;;  %v8164_v21 = vld [vmem:[#allocation3 + $0xac8] sm:$0xff] }
 0x13a   :  { %5067 = vmatpush.bf16.msrb.mxu2 %v8127_v34  ;;  %v8147_v55 = vld [vmem:[#allocation3 + $0xa40] sm:$0xff] }
 0x13b   :  { %5081 = vmatpush.bf16.msrb.mxu3 %v8135_v35  ;;  %v8684_v61 = vadd.f32 %v4809_v57, %v4796_v56  ;;  %v8142_v35 = vld [vmem:[#allocation3 + $0xa18] sm:$0xff]  ;;  %v8155_v56 = vld [vmem:[#allocation3 + $0xa80] sm:$0xff] }
 0x13c   :  { %5040 = vmatpush.bf16.msrb.mxu0 %v8110_v30  ;;  %v8166_v30 = vld [vmem:[#allocation3 + $0xad8] sm:$0xff]  ;;  %v8163_v57 = vld [vmem:[#allocation3 + $0xac0] sm:$0xff] }
 0x13d   :  { %5054 = vmatpush.bf16.msrb.mxu1 %v8118_v38 }
 0x13e   :  { %5068 = vmatpush.bf16.msrb.mxu2 %v8126_v39 }
 0x13f   :  { %5082 = vmatpush.bf16.msrb.mxu3 %v8134_v40 }
 0x140   :  { %5041 = vmatpush.bf16.msrb.mxu0 %v8109_v47  ;;  %v8165_v47 = vld [vmem:[#allocation3 + $0xad0] sm:$0xff] }
 0x141   :  { %5055 = vmatpush.bf16.msrb.mxu1 %v8117_v48 }
 0x142   :  { %5069 = vmatpush.bf16.msrb.mxu2 %v8125_v12  ;;  %v8148_v12 = vld [vmem:[#allocation3 + $0xa48] sm:$0xff] }
 0x143   :  { %5083 = vmatpush.bf16.msrb.mxu3 %v8133_v50  ;;  %v8156_v50 = vld [vmem:[#allocation3 + $0xa88] sm:$0xff] }
 0x144   :  { %5042 = vmatpush.bf16.msrb.mxu0 %v8108_v51 }
 0x145   :  { %5056 = vmatpush.bf16.msrb.mxu1 %v8116_v52 }
 0x146   :  { %5070 = vmatpush.bf16.msrb.mxu2 %v8124_v53 }
 0x147   :  { %5084 = vmatpush.bf16.msrb.mxu3 %v8132_v54  ;;  %v8139_v54 = vld [vmem:[#allocation3 + $0xa00] sm:$0xff] }
 0x148   :  { %5043 = vmatpush.bf16.msrb.mxu0 %v8107_v24  ;;  %v4821_v28 = vpop.f32.mrf.mxu0 }
 0x149   :  { %5057 = vmatpush.bf16.msrb.mxu1 %v8115_v58  ;;  %v4822_v25 = vadd.f32 %v4821_v28, %v8682_v46  ;;  %v4835_v31 = vpop.f32.mrf.mxu1  ;;  %v8157_v46 = vld [vmem:[#allocation3 + $0xa90] sm:$0xff]  ;;  %v8178_v58 = vld [vmem:[#allocation3 + $0xb38] sm:$0xff] }
 0x14a   :  { %5071 = vmatpush.bf16.msrb.mxu2 %v8123_v59  ;;  %v8186_v59 = vld [vmem:[#allocation3 + $0xb78] sm:$0xff] }
 0x14b   :  { %5085 = vmatpush.bf16.msrb.mxu3 %v8131_v60  ;;  %5044 = vmatmul.bf16.vlgmr.msrb.gmra.mxu0 %v5598_v11  ;;  %v4836_v34 = vadd.f32 %v4835_v31, %v4822_v25  ;;  %v5613_v60 = vld [vmem:[%s8880_s0 + $0xa0] sm:$0xf]  ;;  %v8177_v11 = vld [vmem:[#allocation3 + $0xb30] sm:$0xff]  ;;  %v8174_v31 = vld [vmem:[#allocation3 + $0xb18] sm:$0xff] }
 0x14c   :  { %5092 = vmatpush.bf16.msra.mxu0 %v8146_v62  ;;  %5058 = vmatmul.bf16.vlgmr.msrb.gmra.mxu1 %v5602_v14  ;;  %v5621_v62 = vld [vmem:[%s8880_s0 + $0xa8] sm:$0xf]  ;;  %v8193_v14 = vld [vmem:[#allocation3 + $0xbb0] sm:$0xff]  ;;  %v8191_v25 = vld [vmem:[#allocation3 + $0xba0] sm:$0xff] }
 0x14d   :  { %5106 = vmatpush.bf16.msra.mxu1 %v8154_v63  ;;  %5072 = vmatmul.bf16.vlgmr.msrb.gmra.mxu2 %v5606_v13  ;;  %v7808_v63 = vld [vmem:[%s8880_s0 + $0x1a4] sm:$0xf0]  ;;  %v8185_v13 = vld [vmem:[#allocation3 + $0xb70] sm:$0xff] }
 0x14e   :  { %5120 = vmatpush.bf16.msra.mxu2 %v8162_v8  ;;  %5086 = vmatmul.bf16.vlgmr.msrb.gmra.mxu3 %v5610_v16  ;;  %v5622_v7 = vor.u32 %v7808_v63, %v5621_v62  ;;  %v5618_v8 = vor.u32 %v7775_v0, %v5615_v1  ;;  %v8201_v16 = vld [vmem:[#allocation3 + $0xbf0] sm:$0xff]  ;;  %v7778_v62 = vld [vmem:[%s8880_s0 + $0xbc] sm:$0xf] }
 0x14f   :  { %5134 = vmatpush.bf16.msra.mxu3 %v8170_v10  ;;  %v5626_v10 = vor.u32 %v7776_v2, %v5623_v3  ;;  %v5639_v63 = vld [vmem:[%s8880_s0 + $0x1b8] sm:$0xf0] }
 0x150   :  { %5093 = vmatpush.bf16.msra.mxu0 %v8145_v17  ;;  %v4849_v38 = vpop.f32.mrf.mxu2  ;;  %v4823_v41 = vpop.f32.mrf.mxu0  ;;  %v8176_v17 = vld [vmem:[#allocation3 + $0xb28] sm:$0xff]  ;;  %v8226_v0 = vld [vmem:[#allocation3 + $0xcb8] sm:$0xff] }
 0x151   :  { %5107 = vmatpush.bf16.msra.mxu1 %v8153_v18  ;;  %v4850_v39 = vadd.f32 %v4849_v38, %v4836_v34  ;;  %v4863_v40 = vpop.f32.mrf.mxu3  ;;  %v4824_v42 = vadd.f32 %v4823_v41, %v8684_v61  ;;  %v4837_v45 = vpop.f32.mrf.mxu1  ;;  %v7807_v61 = vld [vmem:[%s8880_s0 + $0x19c] sm:$0xf0]  ;;  %v8184_v18 = vld [vmem:[#allocation3 + $0xb68] sm:$0xff]  ;;  %v8198_v34 = vld [vmem:[#allocation3 + $0xbd8] sm:$0xff] }
 0x152   :  { %5121 = vmatpush.bf16.msra.mxu2 %v8161_v15  ;;  %v5614_v6 = vor.u32 %v7807_v61, %v5613_v60  ;;  %v8192_v15 = vld [vmem:[#allocation3 + $0xba8] sm:$0xff]  ;;  %v8181_v41 = vld [vmem:[#allocation3 + $0xb50] sm:$0xff]  ;;  %v8234_v1 = vld [vmem:[#allocation3 + $0xcf8] sm:$0xff] }
 0x153   :  { %5135 = vmatpush.bf16.msra.mxu3 %v8169_v20  ;;  %v8712_v43 = vadd.f32 %v4863_v40, %v4850_v39  ;;  %v4838_v48 = vadd.f32 %v4837_v45, %v4824_v42  ;;  %v8200_v20 = vld [vmem:[#allocation3 + $0xbe8] sm:$0xff]  ;;  %v8173_v40 = vld [vmem:[#allocation3 + $0xb10] sm:$0xff] }
 0x154   :  { %5094 = vmatpush.bf16.msra.mxu0 %v8144_v19  ;;  %v8172_v45 = vld [vmem:[#allocation3 + $0xb08] sm:$0xff]  ;;  %v7777_v60 = vld [vmem:[%s8880_s0 + $0xb4] sm:$0xf] }
 0x155   :  { %5108 = vmatpush.bf16.msra.mxu1 %v8152_v22  ;;  %v5631_v61 = vld [vmem:[%s8880_s0 + $0x1b0] sm:$0xf0] }
 0x156   :  { %5122 = vmatpush.bf16.msra.mxu2 %v8160_v26  ;;  %v8175_v26 = vld [vmem:[#allocation3 + $0xb20] sm:$0xff] }
 0x157   :  { %5136 = vmatpush.bf16.msra.mxu3 %v8168_v27  ;;  %v8183_v27 = vld [vmem:[#allocation3 + $0xb60] sm:$0xff] }
 0x158   :  { %5095 = vmatpush.bf16.msra.mxu0 %v8143_v29  ;;  %v4851_v51 = vpop.f32.mrf.mxu2  ;;  %v8199_v29 = vld [vmem:[#allocation3 + $0xbe0] sm:$0xff] }
 0x159   :  { %5109 = vmatpush.bf16.msra.mxu1 %v8151_v23  ;;  %v4852_v52 = vadd.f32 %v4851_v51, %v4838_v48  ;;  %v4865_v53 = vpop.f32.mrf.mxu3  ;;  %v8196_v48 = vld [vmem:[#allocation3 + $0xbc8] sm:$0xff]  ;;  %v8179_v51 = vld [vmem:[#allocation3 + $0xb40] sm:$0xff] }
 0x15a   :  { %5123 = vmatpush.bf16.msra.mxu2 %v8159_v32  ;;  %v8182_v32 = vld [vmem:[#allocation3 + $0xb58] sm:$0xff] }
 0x15b   :  { %5137 = vmatpush.bf16.msra.mxu3 %v8167_v33  ;;  %v8714_v24 = vadd.f32 %v4865_v53, %v4852_v52  ;;  %v8190_v33 = vld [vmem:[#allocation3 + $0xb98] sm:$0xff]  ;;  %v8187_v52 = vld [vmem:[#allocation3 + $0xb80] sm:$0xff] }
 0x15c   :  { %5096 = vmatpush.bf16.msra.mxu0 %v8142_v35  ;;  %v8195_v53 = vld [vmem:[#allocation3 + $0xbc0] sm:$0xff] }
 0x15d   :  { %5110 = vmatpush.bf16.msra.mxu1 %v8150_v36 }
 0x15e   :  { %5124 = vmatpush.bf16.msra.mxu2 %v8158_v37 }
 0x15f   :  { %5138 = vmatpush.bf16.msra.mxu3 %v8166_v30 }
 0x160   :  { %5097 = vmatpush.bf16.msra.mxu0 %v8141_v44  ;;  %v8197_v44 = vld [vmem:[#allocation3 + $0xbd0] sm:$0xff] }
 0x161   :  { %5111 = vmatpush.bf16.msra.mxu1 %v8149_v9 }
 0x162   :  { %5125 = vmatpush.bf16.msra.mxu2 %v8157_v46  ;;  %v8180_v46 = vld [vmem:[#allocation3 + $0xb48] sm:$0xff] }
 0x163   :  { %5139 = vmatpush.bf16.msra.mxu3 %v8165_v47  ;;  %v8188_v47 = vld [vmem:[#allocation3 + $0xb88] sm:$0xff] }
 0x164   :  { %5098 = vmatpush.bf16.msra.mxu0 %v8140_v49 }
 0x165   :  { %5112 = vmatpush.bf16.msra.mxu1 %v8148_v12 }
 0x166   :  { %5126 = vmatpush.bf16.msra.mxu2 %v8156_v50 }
 0x167   :  { %5140 = vmatpush.bf16.msra.mxu3 %v8164_v21  ;;  %v8171_v21 = vld [vmem:[#allocation3 + $0xb00] sm:$0xff] }
 0x168   :  { %5099 = vmatpush.bf16.msra.mxu0 %v8139_v54  ;;  %v4877_v19 = vpop.f32.mrf.mxu0 }
 0x169   :  { %5113 = vmatpush.bf16.msra.mxu1 %v8147_v55  ;;  %v4878_v22 = vadd.f32 %v4877_v19, %v8712_v43  ;;  %v4891_v28 = vpop.f32.mrf.mxu1  ;;  %v8189_v43 = vld [vmem:[#allocation3 + $0xb90] sm:$0xff]  ;;  %v8210_v55 = vld [vmem:[#allocation3 + $0xc38] sm:$0xff] }
 0x16a   :  { %5127 = vmatpush.bf16.msra.mxu2 %v8155_v56  ;;  %v8218_v56 = vld [vmem:[#allocation3 + $0xc78] sm:$0xff] }
 0x16b   :  { %5141 = vmatpush.bf16.msra.mxu3 %v8163_v57  ;;  %5100 = vmatmul.bf16.vlgmr.msra.gmra.mxu0 %v5614_v6  ;;  %v4892_v23 = vadd.f32 %v4891_v28, %v4878_v22  ;;  %v5629_v57 = vld [vmem:[%s8880_s0 + $0xb0] sm:$0xf]  ;;  %v8223_v22 = vld [vmem:[#allocation3 + $0xca0] sm:$0xff]  ;;  %v8206_v28 = vld [vmem:[#allocation3 + $0xc18] sm:$0xff] }
 0x16c   :  { %5148 = vmatpush.bf16.msrb.mxu0 %v8178_v58  ;;  %5114 = vmatmul.bf16.vlgmr.msra.gmra.mxu1 %v5618_v8  ;;  %v5637_v58 = vld [vmem:[%s8880_s0 + $0xb8] sm:$0xf]  ;;  %v8209_v6 = vld [vmem:[#allocation3 + $0xc30] sm:$0xff] }
 0x16d   :  { %5162 = vmatpush.bf16.msrb.mxu1 %v8186_v59  ;;  %5128 = vmatmul.bf16.vlgmr.msra.gmra.mxu2 %v5622_v7  ;;  %v7810_v59 = vld [vmem:[%s8880_s0 + $0x1b4] sm:$0xf0]  ;;  %v8217_v7 = vld [vmem:[#allocation3 + $0xc70] sm:$0xff] }
 0x16e   :  { %5176 = vmatpush.bf16.msrb.mxu2 %v8194_v4  ;;  %5142 = vmatmul.bf16.vlgmr.msra.gmra.mxu3 %v5626_v10  ;;  %v5638_v3 = vor.u32 %v7810_v59, %v5637_v58  ;;  %v5634_v4 = vor.u32 %v7777_v60, %v5631_v61  ;;  %v8225_v8 = vld [vmem:[#allocation3 + $0xcb0] sm:$0xff]  ;;  %v7780_v58 = vld [vmem:[%s8880_s0 + $0xcc] sm:$0xf]  ;;  %v8258_v60 = vld [vmem:[#allocation3 + $0xdb8] sm:$0xff] }
 0x16f   :  { %5190 = vmatpush.bf16.msrb.mxu3 %v8202_v5  ;;  %v5642_v5 = vor.u32 %v7778_v62, %v5639_v63  ;;  %v8233_v10 = vld [vmem:[#allocation3 + $0xcf0] sm:$0xff]  ;;  %v5655_v59 = vld [vmem:[%s8880_s0 + $0x1c8] sm:$0xf0]  ;;  %v8266_v61 = vld [vmem:[#allocation3 + $0xdf8] sm:$0xff] }
 0x170   :  { %5149 = vmatpush.bf16.msrb.mxu0 %v8177_v11  ;;  %v4905_v35 = vpop.f32.mrf.mxu2  ;;  %v4879_v30 = vpop.f32.mrf.mxu0  ;;  %v8208_v11 = vld [vmem:[#allocation3 + $0xc28] sm:$0xff] }
 0x171   :  { %5163 = vmatpush.bf16.msrb.mxu1 %v8185_v13  ;;  %v4906_v36 = vadd.f32 %v4905_v35, %v4892_v23  ;;  %v4919_v37 = vpop.f32.mrf.mxu3  ;;  %v4880_v38 = vadd.f32 %v4879_v30, %v8714_v24  ;;  %v4893_v42 = vpop.f32.mrf.mxu1  ;;  %v7809_v24 = vld [vmem:[%s8880_s0 + $0x1ac] sm:$0xf0]  ;;  %v8216_v13 = vld [vmem:[#allocation3 + $0xc68] sm:$0xff]  ;;  %v8230_v23 = vld [vmem:[#allocation3 + $0xcd8] sm:$0xff] }
 0x172   :  { %5177 = vmatpush.bf16.msrb.mxu2 %v8193_v14  ;;  %v5630_v2 = vor.u32 %v7809_v24, %v5629_v57  ;;  %v8224_v14 = vld [vmem:[#allocation3 + $0xca8] sm:$0xff]  ;;  %v8213_v30 = vld [vmem:[#allocation3 + $0xc50] sm:$0xff]  ;;  %v7779_v57 = vld [vmem:[%s8880_s0 + $0xc4] sm:$0xf] }
 0x173   :  { %5191 = vmatpush.bf16.msrb.mxu3 %v8201_v16  ;;  %v8742_v39 = vadd.f32 %v4919_v37, %v4906_v36  ;;  %v4894_v9 = vadd.f32 %v4893_v42, %v4880_v38  ;;  %v8232_v16 = vld [vmem:[#allocation3 + $0xce8] sm:$0xff]  ;;  %v8205_v37 = vld [vmem:[#allocation3 + $0xc10] sm:$0xff]  ;;  %v5647_v24 = vld [vmem:[%s8880_s0 + $0x1c0] sm:$0xf0] }
 0x174   :  { %5150 = vmatpush.bf16.msrb.mxu0 %v8176_v17  ;;  %v8204_v42 = vld [vmem:[#allocation3 + $0xc08] sm:$0xff] }
 0x175   :  { %5164 = vmatpush.bf16.msrb.mxu1 %v8184_v18 }
 0x176   :  { %5178 = vmatpush.bf16.msrb.mxu2 %v8192_v15  ;;  %v8207_v15 = vld [vmem:[#allocation3 + $0xc20] sm:$0xff] }
 0x177   :  { %5192 = vmatpush.bf16.msrb.mxu3 %v8200_v20  ;;  %v8215_v20 = vld [vmem:[#allocation3 + $0xc60] sm:$0xff] }
 0x178   :  { %5151 = vmatpush.bf16.msrb.mxu0 %v8175_v26  ;;  %v4907_v49 = vpop.f32.mrf.mxu2  ;;  %v8231_v26 = vld [vmem:[#allocation3 + $0xce0] sm:$0xff] }
 0x179   :  { %5165 = vmatpush.bf16.msrb.mxu1 %v8183_v27  ;;  %v4908_v12 = vadd.f32 %v4907_v49, %v4894_v9  ;;  %v4921_v50 = vpop.f32.mrf.mxu3  ;;  %v8228_v9 = vld [vmem:[#allocation3 + $0xcc8] sm:$0xff]  ;;  %v8211_v49 = vld [vmem:[#allocation3 + $0xc40] sm:$0xff] }
 0x17a   :  { %5179 = vmatpush.bf16.msrb.mxu2 %v8191_v25  ;;  %v8214_v25 = vld [vmem:[#allocation3 + $0xc58] sm:$0xff] }
 0x17b   :  { %5193 = vmatpush.bf16.msrb.mxu3 %v8199_v29  ;;  %v8744_v54 = vadd.f32 %v4921_v50, %v4908_v12  ;;  %v8222_v29 = vld [vmem:[#allocation3 + $0xc98] sm:$0xff]  ;;  %v8219_v12 = vld [vmem:[#allocation3 + $0xc80] sm:$0xff] }
 0x17c   :  { %5152 = vmatpush.bf16.msrb.mxu0 %v8174_v31  ;;  %v8227_v50 = vld [vmem:[#allocation3 + $0xcc0] sm:$0xff] }
 0x17d   :  { %5166 = vmatpush.bf16.msrb.mxu1 %v8182_v32 }
 0x17e   :  { %5180 = vmatpush.bf16.msrb.mxu2 %v8190_v33 }
 0x17f   :  { %5194 = vmatpush.bf16.msrb.mxu3 %v8198_v34 }
 0x180   :  { %5153 = vmatpush.bf16.msrb.mxu0 %v8173_v40  ;;  %v8229_v40 = vld [vmem:[#allocation3 + $0xcd0] sm:$0xff] }
 0x181   :  { %5167 = vmatpush.bf16.msrb.mxu1 %v8181_v41 }
 0x182   :  { %5181 = vmatpush.bf16.msrb.mxu2 %v8189_v43  ;;  %v8212_v43 = vld [vmem:[#allocation3 + $0xc48] sm:$0xff] }
 0x183   :  { %5195 = vmatpush.bf16.msrb.mxu3 %v8197_v44  ;;  %v8220_v44 = vld [vmem:[#allocation3 + $0xc88] sm:$0xff] }
 0x184   :  { %5154 = vmatpush.bf16.msrb.mxu0 %v8172_v45 }
 0x185   :  { %5168 = vmatpush.bf16.msrb.mxu1 %v8180_v46 }
 0x186   :  { %5182 = vmatpush.bf16.msrb.mxu2 %v8188_v47 }
 0x187   :  { %5196 = vmatpush.bf16.msrb.mxu3 %v8196_v48  ;;  %v8203_v48 = vld [vmem:[#allocation3 + $0xc00] sm:$0xff] }
 0x188   :  { %5155 = vmatpush.bf16.msrb.mxu0 %v8171_v21  ;;  %v4933_v17 = vpop.f32.mrf.mxu0 }
 0x189   :  { %5169 = vmatpush.bf16.msrb.mxu1 %v8179_v51  ;;  %v4934_v18 = vadd.f32 %v4933_v17, %v8742_v39  ;;  %v4947_v19 = vpop.f32.mrf.mxu1  ;;  %v8221_v39 = vld [vmem:[#allocation3 + $0xc90] sm:$0xff]  ;;  %v8242_v51 = vld [vmem:[#allocation3 + $0xd38] sm:$0xff] }
 0x18a   :  { %5183 = vmatpush.bf16.msrb.mxu2 %v8187_v52  ;;  %v8250_v52 = vld [vmem:[#allocation3 + $0xd78] sm:$0xff] }
 0x18b   :  { %5197 = vmatpush.bf16.msrb.mxu3 %v8195_v53  ;;  %5156 = vmatmul.bf16.vlgmr.msrb.gmra.mxu0 %v5630_v2  ;;  %v4948_v27 = vadd.f32 %v4947_v19, %v4934_v18  ;;  %v5645_v53 = vld [vmem:[%s8880_s0 + $0xc0] sm:$0xf]  ;;  %v8241_v2 = vld [vmem:[#allocation3 + $0xd30] sm:$0xff]  ;;  %v8238_v17 = vld [vmem:[#allocation3 + $0xd18] sm:$0xff] }
 0x18c   :  { %5204 = vmatpush.bf16.msra.mxu0 %v8210_v55  ;;  %5170 = vmatmul.bf16.vlgmr.msrb.gmra.mxu1 %v5634_v4  ;;  %v5653_v55 = vld [vmem:[%s8880_s0 + $0xc8] sm:$0xf]  ;;  %v8257_v4 = vld [vmem:[#allocation3 + $0xdb0] sm:$0xff]  ;;  %v8246_v18 = vld [vmem:[#allocation3 + $0xd58] sm:$0xff] }
 0x18d   :  { %5218 = vmatpush.bf16.msra.mxu1 %v8218_v56  ;;  %5184 = vmatmul.bf16.vlgmr.msrb.gmra.mxu2 %v5638_v3  ;;  %v7812_v56 = vld [vmem:[%s8880_s0 + $0x1c4] sm:$0xf0]  ;;  %v8249_v3 = vld [vmem:[#allocation3 + $0xd70] sm:$0xff] }
 0x18e   :  { %5232 = vmatpush.bf16.msra.mxu2 %v8226_v0  ;;  %5198 = vmatmul.bf16.vlgmr.msrb.gmra.mxu3 %v5642_v5  ;;  %v5654_v63 = vor.u32 %v7812_v56, %v5653_v55  ;;  %v5650_v0 = vor.u32 %v7779_v57, %v5647_v24  ;;  %v8265_v5 = vld [vmem:[#allocation3 + $0xdf0] sm:$0xff]  ;;  %v8288_v55 = vld [vmem:[#allocation3 + $0xea8] sm:$0xff]  ;;  %v8271_v57 = vld [vmem:[#allocation3 + $0xe20] sm:$0xff] }
 0x18f   :  { %5246 = vmatpush.bf16.msra.mxu3 %v8234_v1  ;;  %v5658_v1 = vor.u32 %v7780_v58, %v5655_v59  ;;  %v8237_v19 = vld [vmem:[#allocation3 + $0xd10] sm:$0xff]  ;;  %v8296_v56 = vld [vmem:[#allocation3 + $0xee8] sm:$0xff]  ;;  %v8279_v24 = vld [vmem:[#allocation3 + $0xe60] sm:$0xff] }
 0x190   :  { %5205 = vmatpush.bf16.msra.mxu0 %v8209_v6  ;;  %v4961_v31 = vpop.f32.mrf.mxu2  ;;  %v4935_v34 = vpop.f32.mrf.mxu0  ;;  %v8240_v6 = vld [vmem:[#allocation3 + $0xd28] sm:$0xff]  ;;  %v8287_v58 = vld [vmem:[#allocation3 + $0xea0] sm:$0xff] }
 0x191   :  { %5219 = vmatpush.bf16.msra.mxu1 %v8217_v7  ;;  %v4962_v32 = vadd.f32 %v4961_v31, %v4948_v27  ;;  %v4975_v33 = vpop.f32.mrf.mxu3  ;;  %v4936_v35 = vadd.f32 %v4935_v34, %v8744_v54  ;;  %v4949_v38 = vpop.f32.mrf.mxu1  ;;  %v7811_v54 = vld [vmem:[%s8880_s0 + $0x1bc] sm:$0xf0]  ;;  %v8248_v7 = vld [vmem:[#allocation3 + $0xd68] sm:$0xff]  ;;  %v8261_v27 = vld [vmem:[#allocation3 + $0xdd0] sm:$0xff] }
 0x192   :  { %5233 = vmatpush.bf16.msra.mxu2 %v8225_v8  ;;  %v5646_v62 = vor.u32 %v7811_v54, %v5645_v53  ;;  %v8256_v8 = vld [vmem:[#allocation3 + $0xda8] sm:$0xff]  ;;  %v8235_v31 = vld [vmem:[#allocation3 + $0xd00] sm:$0xff] }
 0x193   :  { %5247 = vmatpush.bf16.msra.mxu3 %v8233_v10  ;;  %v8772_v36 = vadd.f32 %v4975_v33, %v4962_v32  ;;  %v4950_v41 = vadd.f32 %v4949_v38, %v4936_v35  ;;  %v8264_v10 = vld [vmem:[#allocation3 + $0xde8] sm:$0xff]  ;;  %v8243_v32 = vld [vmem:[#allocation3 + $0xd40] sm:$0xff]  ;;  %v8274_v35 = vld [vmem:[#allocation3 + $0xe38] sm:$0xff] }
 0x194   :  { %5206 = vmatpush.bf16.msra.mxu0 %v8208_v11  ;;  %v8239_v11 = vld [vmem:[#allocation3 + $0xd20] sm:$0xff]  ;;  %v7813_v38 = vld [vmem:[%s8880_s0 + $0x1cc] sm:$0xf0]  ;;  %v8272_v53 = vld [vmem:[#allocation3 + $0xe28] sm:$0xff] }
 0x195   :  { %5220 = vmatpush.bf16.msra.mxu1 %v8216_v13  ;;  %v8247_v13 = vld [vmem:[#allocation3 + $0xd60] sm:$0xff]  ;;  %v8280_v54 = vld [vmem:[#allocation3 + $0xe68] sm:$0xff] }
 0x196   :  { %5234 = vmatpush.bf16.msra.mxu2 %v8224_v14  ;;  %v8255_v14 = vld [vmem:[#allocation3 + $0xda0] sm:$0xff] }
 0x197   :  { %5248 = vmatpush.bf16.msra.mxu3 %v8232_v16  ;;  %v8263_v16 = vld [vmem:[#allocation3 + $0xde0] sm:$0xff] }
 0x198   :  { %5207 = vmatpush.bf16.msra.mxu0 %v8207_v15  ;;  %v4963_v45 = vpop.f32.mrf.mxu2  ;;  %v8254_v15 = vld [vmem:[#allocation3 + $0xd98] sm:$0xff]  ;;  %v8251_v33 = vld [vmem:[#allocation3 + $0xd80] sm:$0xff] }
 0x199   :  { %5221 = vmatpush.bf16.msra.mxu1 %v8215_v20  ;;  %v4964_v46 = vadd.f32 %v4963_v45, %v4950_v41  ;;  %v4977_v47 = vpop.f32.mrf.mxu3  ;;  %v8262_v20 = vld [vmem:[#allocation3 + $0xdd8] sm:$0xff]  ;;  %v8259_v34 = vld [vmem:[#allocation3 + $0xdc0] sm:$0xff]  ;;  %v7781_v41 = vld [vmem:[%s8880_s0 + $0xd4] sm:$0xf] }
 0x19a   :  { %5235 = vmatpush.bf16.msra.mxu2 %v8223_v22  ;;  %v8245_v22 = vld [vmem:[#allocation3 + $0xd50] sm:$0xff]  ;;  %v8298_v45 = vld [vmem:[#allocation3 + $0xef8] sm:$0xff]  ;;  %v8295_v59 = vld [vmem:[#allocation3 + $0xee0] sm:$0xff] }
 0x19b   :  { %5249 = vmatpush.bf16.msra.mxu3 %v8231_v26  ;;  %v8774_v21 = vadd.f32 %v4977_v47, %v4964_v46  ;;  %v8253_v26 = vld [vmem:[#allocation3 + $0xd90] sm:$0xff] }
 0x19c   :  { %5208 = vmatpush.bf16.msra.mxu0 %v8206_v28  ;;  %v8236_v28 = vld [vmem:[#allocation3 + $0xd08] sm:$0xff] }
 0x19d   :  { %5222 = vmatpush.bf16.msra.mxu1 %v8214_v25  ;;  %v8244_v25 = vld [vmem:[#allocation3 + $0xd48] sm:$0xff] }
 0x19e   :  { %5236 = vmatpush.bf16.msra.mxu2 %v8222_v29  ;;  %v8252_v29 = vld [vmem:[#allocation3 + $0xd88] sm:$0xff] }
 0x19f   :  { %5250 = vmatpush.bf16.msra.mxu3 %v8230_v23  ;;  %v8260_v23 = vld [vmem:[#allocation3 + $0xdc8] sm:$0xff] }
 0x1a0   :  { %5209 = vmatpush.bf16.msra.mxu0 %v8205_v37  ;;  %v8282_v37 = vld [vmem:[#allocation3 + $0xe78] sm:$0xff] }
 0x1a1   :  { %5223 = vmatpush.bf16.msra.mxu1 %v8213_v30  ;;  %v5661_v30 = vld [vmem:[%s8880_s0 + $0xd0] sm:$0xf] }
 0x1a2   :  { %5237 = vmatpush.bf16.msra.mxu2 %v8221_v39  ;;  %v5669_v39 = vld [vmem:[%s8880_s0 + $0xd8] sm:$0xf]  ;;  %v5662_v46 = vor.u32 %v7813_v38, %v5661_v30  ;;  %v8304_v30 = vld [vmem:[#allocation3 + $0xf28] sm:$0xff] }
 0x1a3   :  { %5251 = vmatpush.bf16.msra.mxu3 %v8229_v40  ;;  %v7814_v40 = vld [vmem:[%s8880_s0 + $0x1d4] sm:$0xf0]  ;;  %v8312_v38 = vld [vmem:[#allocation3 + $0xf68] sm:$0xff] }
 0x1a4   :  { %5210 = vmatpush.bf16.msra.mxu0 %v8204_v42  ;;  %v5663_v42 = vld [vmem:[%s8880_s0 + $0x1d0] sm:$0xf0]  ;;  %v5670_v47 = vor.u32 %v7814_v40, %v5669_v39  ;;  %v8320_v39 = vld [vmem:[#allocation3 + $0xfa8] sm:$0xff] }
 0x1a5   :  { %5224 = vmatpush.bf16.msra.mxu1 %v8212_v43  ;;  %v7782_v43 = vld [vmem:[%s8880_s0 + $0xdc] sm:$0xf]  ;;  %v8328_v40 = vld [vmem:[#allocation3 + $0xfe8] sm:$0xff] }
 0x1a6   :  { %5238 = vmatpush.bf16.msra.mxu2 %v8220_v44  ;;  %v5671_v44 = vld [vmem:[%s8880_s0 + $0x1d8] sm:$0xf0] }
 0x1a7   :  { %5252 = vmatpush.bf16.msra.mxu3 %v8228_v9  ;;  %v8290_v9 = vld [vmem:[#allocation3 + $0xeb8] sm:$0xff] }
 0x1a8   :  { %5211 = vmatpush.bf16.msra.mxu0 %v8203_v48  ;;  %v5666_v48 = vor.u32 %v7781_v41, %v5663_v42  ;;  %v8303_v41 = vld [vmem:[#allocation3 + $0xf20] sm:$0xff] }
 0x1a9   :  { %5225 = vmatpush.bf16.msra.mxu1 %v8211_v49  ;;  %v5674_v49 = vor.u32 %v7782_v43, %v5671_v44  ;;  %v8311_v42 = vld [vmem:[#allocation3 + $0xf60] sm:$0xff] }
 0x1aa   :  { %5239 = vmatpush.bf16.msra.mxu2 %v8219_v12  ;;  %v8273_v12 = vld [vmem:[#allocation3 + $0xe30] sm:$0xff]  ;;  %v8319_v43 = vld [vmem:[#allocation3 + $0xfa0] sm:$0xff] }
 0x1ab   :  { %5253 = vmatpush.bf16.msra.mxu3 %v8227_v50  ;;  %5212 = vmatmul.bf16.vlgmr.msra.gmra.mxu0 %v5646_v62  ;;  %v8281_v50 = vld [vmem:[#allocation3 + $0xe70] sm:$0xff]  ;;  %v8286_v62 = vld [vmem:[#allocation3 + $0xe98] sm:$0xff]  ;;  %v8327_v44 = vld [vmem:[#allocation3 + $0xfe0] sm:$0xff] }
 0x1ac   :  { %5260 = vmatpush.bf16.msrb.mxu0 %v8242_v51  ;;  %5226 = vmatmul.bf16.vlgmr.msra.gmra.mxu1 %v5650_v0  ;;  %v8289_v51 = vld [vmem:[#allocation3 + $0xeb0] sm:$0xff] }
 0x1ad   :  { %5274 = vmatpush.bf16.msrb.mxu1 %v8250_v52  ;;  %5240 = vmatmul.bf16.vlgmr.msra.gmra.mxu2 %v5654_v63  ;;  %v8297_v52 = vld [vmem:[#allocation3 + $0xef0] sm:$0xff]  ;;  %v8294_v63 = vld [vmem:[#allocation3 + $0xed8] sm:$0xff] }
 0x1ae   :  { %5288 = vmatpush.bf16.msrb.mxu2 %v8258_v60  ;;  %5254 = vmatmul.bf16.vlgmr.msra.gmra.mxu3 %v5658_v1  ;;  %v8270_v60 = vld [vmem:[#allocation3 + $0xe18] sm:$0xff]  ;;  %v8269_v0 = vld [vmem:[#allocation3 + $0xe10] sm:$0xff] }
 0x1af   :  { %5302 = vmatpush.bf16.msrb.mxu3 %v8266_v61  ;;  %v8278_v61 = vld [vmem:[#allocation3 + $0xe58] sm:$0xff]  ;;  %v8277_v1 = vld [vmem:[#allocation3 + $0xe50] sm:$0xff] }
 0x1b0   :  { %5261 = vmatpush.bf16.msrb.mxu0 %v8241_v2  ;;  %v8285_v2 = vld [vmem:[#allocation3 + $0xe90] sm:$0xff] }
 0x1b1   :  { %5275 = vmatpush.bf16.msrb.mxu1 %v8249_v3  ;;  %v8293_v3 = vld [vmem:[#allocation3 + $0xed0] sm:$0xff] }
 0x1b2   :  { %5289 = vmatpush.bf16.msrb.mxu2 %v8257_v4  ;;  %v8268_v4 = vld [vmem:[#allocation3 + $0xe08] sm:$0xff] }
 0x1b3   :  { %5303 = vmatpush.bf16.msrb.mxu3 %v8265_v5  ;;  %v8276_v5 = vld [vmem:[#allocation3 + $0xe48] sm:$0xff] }
 0x1b4   :  { %5262 = vmatpush.bf16.msrb.mxu0 %v8240_v6  ;;  %v8284_v6 = vld [vmem:[#allocation3 + $0xe88] sm:$0xff] }
 0x1b5   :  { %5276 = vmatpush.bf16.msrb.mxu1 %v8248_v7  ;;  %v8292_v7 = vld [vmem:[#allocation3 + $0xec8] sm:$0xff] }
 0x1b6   :  { %5290 = vmatpush.bf16.msrb.mxu2 %v8256_v8  ;;  %v8267_v8 = vld [vmem:[#allocation3 + $0xe00] sm:$0xff] }
 0x1b7   :  { %5304 = vmatpush.bf16.msrb.mxu3 %v8264_v10  ;;  %v8275_v10 = vld [vmem:[#allocation3 + $0xe40] sm:$0xff] }
 0x1b8   :  { %5263 = vmatpush.bf16.msrb.mxu0 %v8239_v11  ;;  %v8283_v11 = vld [vmem:[#allocation3 + $0xe80] sm:$0xff] }
 0x1b9   :  { %5277 = vmatpush.bf16.msrb.mxu1 %v8247_v13  ;;  %v8291_v13 = vld [vmem:[#allocation3 + $0xec0] sm:$0xff] }
 0x1ba   :  { %5291 = vmatpush.bf16.msrb.mxu2 %v8255_v14  ;;  %v8306_v14 = vld [vmem:[#allocation3 + $0xf38] sm:$0xff] }
 0x1bb   :  { %5305 = vmatpush.bf16.msrb.mxu3 %v8263_v16  ;;  %v8314_v16 = vld [vmem:[#allocation3 + $0xf78] sm:$0xff] }
 0x1bc   :  { %5264 = vmatpush.bf16.msrb.mxu0 %v8238_v17  ;;  %v5677_v17 = vld [vmem:[%s8880_s0 + $0xe0] sm:$0xf] }
 0x1bd   :  { %5278 = vmatpush.bf16.msrb.mxu1 %v8246_v18  ;;  %v7815_v18 = vld [vmem:[%s8880_s0 + $0x1dc] sm:$0xf0] }
 0x1be   :  { %5292 = vmatpush.bf16.msrb.mxu2 %v8254_v15  ;;  %v5685_v15 = vld [vmem:[%s8880_s0 + $0xe8] sm:$0xf] }
 0x1bf   :  { %5306 = vmatpush.bf16.msrb.mxu3 %v8262_v20  ;;  %v7816_v20 = vld [vmem:[%s8880_s0 + $0x1e4] sm:$0xf0] }
 0x1c0   :  { %5265 = vmatpush.bf16.msrb.mxu0 %v8237_v19  ;;  %v7783_v19 = vld [vmem:[%s8880_s0 + $0xe4] sm:$0xf] }
 0x1c1   :  { %5279 = vmatpush.bf16.msrb.mxu1 %v8245_v22  ;;  %v5679_v22 = vld [vmem:[%s8880_s0 + $0x1e0] sm:$0xf0] }
 0x1c2   :  { %5293 = vmatpush.bf16.msrb.mxu2 %v8253_v26  ;;  %v7784_v26 = vld [vmem:[%s8880_s0 + $0xec] sm:$0xf] }
 0x1c3   :  { %5307 = vmatpush.bf16.msrb.mxu3 %v8261_v27  ;;  %v5687_v27 = vld [vmem:[%s8880_s0 + $0x1e8] sm:$0xf0] }
 0x1c4   :  { %5266 = vmatpush.bf16.msrb.mxu0 %v8236_v28  ;;  %v8322_v28 = vld [vmem:[#allocation3 + $0xfb8] sm:$0xff] }
 0x1c5   :  { %5280 = vmatpush.bf16.msrb.mxu1 %v8244_v25  ;;  %v8330_v25 = vld [vmem:[#allocation3 + $0xff8] sm:$0xff] }
 0x1c6   :  { %5294 = vmatpush.bf16.msrb.mxu2 %v8252_v29  ;;  %v5678_v29 = vor.u32 %v7815_v18, %v5677_v17 }
 0x1c7   :  { %5308 = vmatpush.bf16.msrb.mxu3 %v8260_v23  ;;  %v5686_v23 = vor.u32 %v7816_v20, %v5685_v15 }
 0x1c8   :  { %5267 = vmatpush.bf16.msrb.mxu0 %v8235_v31  ;;  %v5682_v31 = vor.u32 %v7783_v19, %v5679_v22 }
 0x1c9   :  { %5281 = vmatpush.bf16.msrb.mxu1 %v8243_v32  ;;  %v5690_v32 = vor.u32 %v7784_v26, %v5687_v27 }
 0x1ca   :  { %5295 = vmatpush.bf16.msrb.mxu2 %v8251_v33  ;;  %v8305_v33 = vld [vmem:[#allocation3 + $0xf30] sm:$0xff] }
 0x1cb   :  { %5309 = vmatpush.bf16.msrb.mxu3 %v8259_v34  ;;  %5268 = vmatmul.bf16.vlgmr.msrb.gmra.mxu0 %v5662_v46  ;;  %v8313_v34 = vld [vmem:[#allocation3 + $0xf70] sm:$0xff]  ;;  %v8318_v46 = vld [vmem:[#allocation3 + $0xf98] sm:$0xff] }
 0x1cc   :  { %5316 = vmatpush.bf16.msra.mxu0 %v8274_v35  ;;  %5282 = vmatmul.bf16.vlgmr.msrb.gmra.mxu1 %v5666_v48  ;;  %v8321_v35 = vld [vmem:[#allocation3 + $0xfb0] sm:$0xff] }
 0x1cd   :  { %5330 = vmatpush.bf16.msra.mxu1 %v8282_v37  ;;  %5296 = vmatmul.bf16.vlgmr.msrb.gmra.mxu2 %v5670_v47  ;;  %v8329_v37 = vld [vmem:[#allocation3 + $0xff0] sm:$0xff]  ;;  %v8326_v47 = vld [vmem:[#allocation3 + $0xfd8] sm:$0xff] }
 0x1ce   :  { %5344 = vmatpush.bf16.msra.mxu2 %v8290_v9  ;;  %5310 = vmatmul.bf16.vlgmr.msrb.gmra.mxu3 %v5674_v49  ;;  %v8302_v9 = vld [vmem:[#allocation3 + $0xf18] sm:$0xff]  ;;  %v8301_v48 = vld [vmem:[#allocation3 + $0xf10] sm:$0xff] }
 0x1cf   :  { %5358 = vmatpush.bf16.msra.mxu3 %v8298_v45  ;;  %v8310_v45 = vld [vmem:[#allocation3 + $0xf58] sm:$0xff]  ;;  %v8309_v49 = vld [vmem:[#allocation3 + $0xf50] sm:$0xff] }
 0x1d0   :  { %5317 = vmatpush.bf16.msra.mxu0 %v8273_v12  ;;  %v8317_v12 = vld [vmem:[#allocation3 + $0xf90] sm:$0xff] }
 0x1d1   :  { %5331 = vmatpush.bf16.msra.mxu1 %v8281_v50  ;;  %v8325_v50 = vld [vmem:[#allocation3 + $0xfd0] sm:$0xff] }
 0x1d2   :  { %5345 = vmatpush.bf16.msra.mxu2 %v8289_v51  ;;  %v8300_v51 = vld [vmem:[#allocation3 + $0xf08] sm:$0xff] }
 0x1d3   :  { %5359 = vmatpush.bf16.msra.mxu3 %v8297_v52  ;;  %v8308_v52 = vld [vmem:[#allocation3 + $0xf48] sm:$0xff] }
 0x1d4   :  { %5318 = vmatpush.bf16.msra.mxu0 %v8272_v53  ;;  %v8316_v53 = vld [vmem:[#allocation3 + $0xf88] sm:$0xff] }
 0x1d5   :  { %5332 = vmatpush.bf16.msra.mxu1 %v8280_v54  ;;  %v8324_v54 = vld [vmem:[#allocation3 + $0xfc8] sm:$0xff] }
 0x1d6   :  { %5346 = vmatpush.bf16.msra.mxu2 %v8288_v55  ;;  %v8299_v55 = vld [vmem:[#allocation3 + $0xf00] sm:$0xff] }
 0x1d7   :  { %5360 = vmatpush.bf16.msra.mxu3 %v8296_v56  ;;  %v8307_v56 = vld [vmem:[#allocation3 + $0xf40] sm:$0xff] }
 0x1d8   :  { %5319 = vmatpush.bf16.msra.mxu0 %v8271_v57  ;;  %v8315_v57 = vld [vmem:[#allocation3 + $0xf80] sm:$0xff] }
 0x1d9   :  { %5333 = vmatpush.bf16.msra.mxu1 %v8279_v24  ;;  %v8323_v24 = vld [vmem:[#allocation3 + $0xfc0] sm:$0xff] }
 0x1da   :  { %5347 = vmatpush.bf16.msra.mxu2 %v8287_v58  ;;  %v5693_v58 = vld [vmem:[%s8880_s0 + $0xf0] sm:$0xf] }
 0x1db   :  { %5361 = vmatpush.bf16.msra.mxu3 %v8295_v59  ;;  %v7817_v59 = vld [vmem:[%s8880_s0 + $0x1ec] sm:$0xf0] }
 0x1dc   :  { %5320 = vmatpush.bf16.msra.mxu0 %v8270_v60  ;;  %v7785_v60 = vld [vmem:[%s8880_s0 + $0xf4] sm:$0xf] }
 0x1dd   :  { %5334 = vmatpush.bf16.msra.mxu1 %v8278_v61  ;;  %v5695_v61 = vld [vmem:[%s8880_s0 + $0x1f0] sm:$0xf0] }
 0x1de   :  { %5348 = vmatpush.bf16.msra.mxu2 %v8286_v62  ;;  %v5701_v62 = vld [vmem:[%s8880_s0 + $0xf8] sm:$0xf] }
 0x1df   :  { %5362 = vmatpush.bf16.msra.mxu3 %v8294_v63  ;;  %v7818_v63 = vld [vmem:[%s8880_s0 + $0x1f4] sm:$0xf0] }
 0x1e0   :  { %5321 = vmatpush.bf16.msra.mxu0 %v8269_v0  ;;  %v7786_v0 = vld [vmem:[%s8880_s0 + $0xfc] sm:$0xf] }
 0x1e1   :  { %5335 = vmatpush.bf16.msra.mxu1 %v8277_v1  ;;  %v5703_v1 = vld [vmem:[%s8880_s0 + $0x1f8] sm:$0xf0] }
 0x1e2   :  { %5349 = vmatpush.bf16.msra.mxu2 %v8285_v2  ;;  %v5694_v2 = vor.u32 %v7817_v59, %v5693_v58 }
 0x1e3   :  { %5363 = vmatpush.bf16.msra.mxu3 %v8293_v3  ;;  %v5698_v3 = vor.u32 %v7785_v60, %v5695_v61 }
 0x1e4   :  { %5322 = vmatpush.bf16.msra.mxu0 %v8268_v4  ;;  %v5702_v4 = vor.u32 %v7818_v63, %v5701_v62 }
 0x1e5   :  { %5336 = vmatpush.bf16.msra.mxu1 %v8276_v5  ;;  %v5706_v5 = vor.u32 %v7786_v0, %v5703_v1 }
 0x1e6   :  { %5350 = vmatpush.bf16.msra.mxu2 %v8284_v6  ;;  %v4989_v6 = vpop.f32.mrf.mxu0 }
 0x1e7   :  { %5364 = vmatpush.bf16.msra.mxu3 %v8292_v7  ;;  %v5003_v7 = vpop.f32.mrf.mxu1 }
 0x1e8   :  { %5323 = vmatpush.bf16.msra.mxu0 %v8267_v8  ;;  %v5017_v8 = vpop.f32.mrf.mxu2 }
 0x1e9   :  { %5337 = vmatpush.bf16.msra.mxu1 %v8275_v10  ;;  %v5031_v10 = vpop.f32.mrf.mxu3 }
 0x1ea   :  { %5351 = vmatpush.bf16.msra.mxu2 %v8283_v11 }
 0x1eb   :  { %5365 = vmatpush.bf16.msra.mxu3 %v8291_v13  ;;  %5324 = vmatmul.bf16.vlgmr.msra.gmra.mxu0 %v5678_v29 }
 0x1ec   :  { %5372 = vmatpush.bf16.msrb.mxu0 %v8306_v14  ;;  %5338 = vmatmul.bf16.vlgmr.msra.gmra.mxu1 %v5682_v31  ;;  %v4990_v31 = vadd.f32 %v4989_v6, %v8772_v36 }
 0x1ed   :  { %5386 = vmatpush.bf16.msrb.mxu1 %v8314_v16  ;;  %5352 = vmatmul.bf16.vlgmr.msra.gmra.mxu2 %v5686_v23 }
 0x1ee   :  { %5400 = vmatpush.bf16.msrb.mxu2 %v8322_v28  ;;  %5366 = vmatmul.bf16.vlgmr.msra.gmra.mxu3 %v5690_v32  ;;  %v4991_v11 = vpop.f32.mrf.mxu0 }
 0x1ef   :  { %5414 = vmatpush.bf16.msrb.mxu3 %v8330_v25  ;;  %v5005_v13 = vpop.f32.mrf.mxu1 }
 0x1f0   :  { %5373 = vmatpush.bf16.msrb.mxu0 %v8305_v33  ;;  %v5019_v14 = vpop.f32.mrf.mxu2  ;;  %v5004_v33 = vadd.f32 %v5003_v7, %v4990_v31 }
 0x1f1   :  { %5387 = vmatpush.bf16.msrb.mxu1 %v8313_v34  ;;  %v5033_v16 = vpop.f32.mrf.mxu3 }
 0x1f2   :  { %5401 = vmatpush.bf16.msrb.mxu2 %v8321_v35  ;;  %v5018_v35 = vadd.f32 %v5017_v8, %v5004_v33 }
 0x1f3   :  { %5415 = vmatpush.bf16.msrb.mxu3 %v8329_v37  ;;  %v4992_v37 = vadd.f32 %v4991_v11, %v8774_v21 }
 0x1f4   :  { %5374 = vmatpush.bf16.msrb.mxu0 %v8304_v30 }
 0x1f5   :  { %5388 = vmatpush.bf16.msrb.mxu1 %v8312_v38 }
 0x1f6   :  { %5402 = vmatpush.bf16.msrb.mxu2 %v8320_v39  ;;  %v5045_v17 = vpop.f32.mrf.mxu0  ;;  %v5032_v39 = vadd.f32 %v5031_v10, %v5018_v35 }
 0x1f7   :  { %5416 = vmatpush.bf16.msrb.mxu3 %v8328_v40  ;;  %v5059_v18 = vpop.f32.mrf.mxu1 }
 0x1f8   :  { %5375 = vmatpush.bf16.msrb.mxu0 %v8303_v41  ;;  %v5073_v15 = vpop.f32.mrf.mxu2  ;;  %v5006_v41 = vadd.f32 %v5005_v13, %v4992_v37 }
 0x1f9   :  { %5389 = vmatpush.bf16.msrb.mxu1 %v8311_v42  ;;  %v5087_v20 = vpop.f32.mrf.mxu3  ;;  %v5046_v42 = vadd.f32 %v5045_v17, %v5032_v39 }
 0x1fa   :  { %5403 = vmatpush.bf16.msrb.mxu2 %v8319_v43 }
 0x1fb   :  { %5417 = vmatpush.bf16.msrb.mxu3 %v8327_v44  ;;  %v5020_v44 = vadd.f32 %v5019_v14, %v5006_v41 }
 0x1fc   :  { %5376 = vmatpush.bf16.msrb.mxu0 %v8302_v9  ;;  %v5060_v9 = vadd.f32 %v5059_v18, %v5046_v42 }
 0x1fd   :  { %5390 = vmatpush.bf16.msrb.mxu1 %v8310_v45 }
 0x1fe   :  { %5404 = vmatpush.bf16.msrb.mxu2 %v8318_v46  ;;  %v5047_v19 = vpop.f32.mrf.mxu0 }
 0x1ff   :  { %5418 = vmatpush.bf16.msrb.mxu3 %v8326_v47  ;;  %v5061_v22 = vpop.f32.mrf.mxu1  ;;  %v5034_v47 = vadd.f32 %v5033_v16, %v5020_v44 }
 0x200   :  { %5377 = vmatpush.bf16.msrb.mxu0 %v8301_v48  ;;  %v5075_v26 = vpop.f32.mrf.mxu2  ;;  %v5074_v48 = vadd.f32 %v5073_v15, %v5060_v9 }
 0x201   :  { %5391 = vmatpush.bf16.msrb.mxu1 %v8309_v49  ;;  %v5089_v27 = vpop.f32.mrf.mxu3  ;;  %v5048_v36 = vadd.f32 %v5047_v19, %v5034_v47 }
 0x202   :  { %5405 = vmatpush.bf16.msrb.mxu2 %v8317_v12  ;;  %v5088_v12 = vadd.f32 %v5087_v20, %v5074_v48 }
 0x203   :  { %5419 = vmatpush.bf16.msrb.mxu3 %v8325_v50 }
 0x204   :  { %5378 = vmatpush.bf16.msrb.mxu0 %v8300_v51  ;;  %v5062_v51 = vadd.f32 %v5061_v22, %v5048_v36 }
 0x205   :  { %5392 = vmatpush.bf16.msrb.mxu1 %v8308_v52 }
 0x206   :  { %5406 = vmatpush.bf16.msrb.mxu2 %v8316_v53  ;;  %v5101_v28 = vpop.f32.mrf.mxu0  ;;  %v5076_v21 = vadd.f32 %v5075_v26, %v5062_v51 }
 0x207   :  { %5420 = vmatpush.bf16.msrb.mxu3 %v8324_v54  ;;  %v5115_v25 = vpop.f32.mrf.mxu1  ;;  %v5102_v52 = vadd.f32 %v5101_v28, %v5088_v12 }
 0x208   :  { %5379 = vmatpush.bf16.msrb.mxu0 %v8299_v55  ;;  %v5129_v29 = vpop.f32.mrf.mxu2 }
 0x209   :  { %5393 = vmatpush.bf16.msrb.mxu1 %v8307_v56  ;;  %v5143_v23 = vpop.f32.mrf.mxu3  ;;  %v5116_v55 = vadd.f32 %v5115_v25, %v5102_v52 }
 0x20a   :  { %5407 = vmatpush.bf16.msrb.mxu2 %v8315_v57  ;;  %v5090_v57 = vadd.f32 %v5089_v27, %v5076_v21 }
 0x20b   :  { %5421 = vmatpush.bf16.msrb.mxu3 %v8323_v24  ;;  %5380 = vmatmul.bf16.vlgmr.msrb.gmra.mxu0 %v5694_v2  ;;  %v5130_v24 = vadd.f32 %v5129_v29, %v5116_v55 }
 0x20c   :  { %5394 = vmatmul.bf16.vlgmr.msrb.gmra.mxu1 %v5698_v3 }
 0x20d   :  { %5408 = vmatmul.bf16.vlgmr.msrb.gmra.mxu2 %v5702_v4  ;;  %v5144_v60 = vadd.f32 %v5143_v23, %v5130_v24 }
 0x20e   :  { %5422 = vmatmul.bf16.vlgmr.msrb.gmra.mxu3 %v5706_v5  ;;  %v5103_v32 = vpop.f32.mrf.mxu0 }
 0x20f   :  { %v5117_v34 = vpop.f32.mrf.mxu1  ;;  %v5104_v59 = vadd.f32 %v5103_v32, %v5090_v57 }
 0x210   :  { %v5131_v30 = vpop.f32.mrf.mxu2 }
 0x211   :  { %v5145_v38 = vpop.f32.mrf.mxu3  ;;  %v5118_v63 = vadd.f32 %v5117_v34, %v5104_v59 }
 0x213   :  { %v5132_v1 = vadd.f32 %v5131_v30, %v5118_v63 }
 0x215   :  { %v5146_v5 = vadd.f32 %v5145_v38, %v5132_v1 }
 0x216   :  { %v5157_v40 = vpop.f32.mrf.mxu0 }
 0x217   :  { %v5171_v43 = vpop.f32.mrf.mxu1  ;;  %v5158_v0 = vadd.f32 %v5157_v40, %v5144_v60 }
 0x218   :  { %v5185_v45 = vpop.f32.mrf.mxu2 }
 0x219   :  { %v5199_v46 = vpop.f32.mrf.mxu3  ;;  %v5172_v3 = vadd.f32 %v5171_v43, %v5158_v0 }
 0x21b   :  { %v5186_v6 = vadd.f32 %v5185_v45, %v5172_v3 }
 0x21d   :  { %v5200_v11 = vadd.f32 %v5199_v46, %v5186_v6 }
 0x21e   :  { %v5159_v49 = vpop.f32.mrf.mxu0 }
 0x21f   :  { %v5173_v50 = vpop.f32.mrf.mxu1  ;;  %v5160_v7 = vadd.f32 %v5159_v49, %v5146_v5 }
 0x220   :  { %v5187_v53 = vpop.f32.mrf.mxu2 }
 0x221   :  { %v5201_v54 = vpop.f32.mrf.mxu3  ;;  %v5174_v14 = vadd.f32 %v5173_v50, %v5160_v7 }
 0x223   :  { %v5188_v18 = vadd.f32 %v5187_v53, %v5174_v14 }
 0x225   :  { %v5202_v22 = vadd.f32 %v5201_v54, %v5188_v18 }
 0x228   :  { %v5213_v56 = vpop.f32.mrf.mxu0 }
 0x229   :  { %v5227_v58 = vpop.f32.mrf.mxu1  ;;  %v5214_v16 = vadd.f32 %v5213_v56, %v5200_v11 }
 0x22b   :  { %v5228_v15 = vadd.f32 %v5227_v58, %v5214_v16 }
 0x230   :  { %v5241_v61 = vpop.f32.mrf.mxu2  ;;  %v5215_v2 = vpop.f32.mrf.mxu0 }
 0x231   :  { %v5255_v62 = vpop.f32.mrf.mxu3  ;;  %v5229_v4 = vpop.f32.mrf.mxu1  ;;  %v5242_v26 = vadd.f32 %v5241_v61, %v5228_v15  ;;  %v5216_v27 = vadd.f32 %v5215_v2, %v5202_v22  ;;  %v8335_v61 = vld [vmem:[#allocation5] ss:$0 sm:$0xff] }
 0x233   :  { %v5256_v25 = vadd.f32 %v5255_v62, %v5242_v26  ;;  %v5230_v23 = vadd.f32 %v5229_v4, %v5216_v27 }
 0x238   :  { %v5243_v8 = vpop.f32.mrf.mxu2 }
 0x239   :  { %v5257_v10 = vpop.f32.mrf.mxu3  ;;  %v5244_v32 = vadd.f32 %v5243_v8, %v5230_v23 }
 0x23b   :  { %v5258_v30 = vadd.f32 %v5257_v10, %v5244_v32 }
 0x248   :  { %v5269_v13 = vpop.f32.mrf.mxu0 }
 0x249   :  { %v5283_v17 = vpop.f32.mrf.mxu1  ;;  %v5270_v31 = vadd.f32 %v5269_v13, %v5256_v25 }
 0x24b   :  { %v5284_v35 = vadd.f32 %v5283_v17, %v5270_v31 }
 0x250   :  { %v5297_v20 = vpop.f32.mrf.mxu2  ;;  %v5271_v28 = vpop.f32.mrf.mxu0 }
 0x251   :  { %v5311_v19 = vpop.f32.mrf.mxu3  ;;  %v5285_v29 = vpop.f32.mrf.mxu1  ;;  %v5298_v38 = vadd.f32 %v5297_v20, %v5284_v35  ;;  %v5272_v40 = vadd.f32 %v5271_v28, %v5258_v30 }
 0x253   :  { %v5312_v41 = vadd.f32 %v5311_v19, %v5298_v38  ;;  %v5286_v44 = vadd.f32 %v5285_v29, %v5272_v40 }
 0x258   :  { %v5299_v33 = vpop.f32.mrf.mxu2 }
 0x259   :  { %v5313_v34 = vpop.f32.mrf.mxu3  ;;  %v5300_v45 = vadd.f32 %v5299_v33, %v5286_v44 }
 0x25b   :  { %v5314_v36 = vadd.f32 %v5313_v34, %v5300_v45 }
 0x268   :  { %v5325_v37 = vpop.f32.mrf.mxu0 }
 0x269   :  { %v5339_v39 = vpop.f32.mrf.mxu1  ;;  %v5326_v9 = vadd.f32 %v5325_v37, %v5312_v41 }
 0x26b   :  { %v5340_v47 = vadd.f32 %v5339_v39, %v5326_v9 }
 0x270   :  { %v5353_v42 = vpop.f32.mrf.mxu2  ;;  %v5327_v46 = vpop.f32.mrf.mxu0 }
 0x271   :  { %v5367_v43 = vpop.f32.mrf.mxu3  ;;  %v5341_v48 = vpop.f32.mrf.mxu1  ;;  %v5354_v49 = vadd.f32 %v5353_v42, %v5340_v47  ;;  %v5328_v12 = vadd.f32 %v5327_v46, %v5314_v36 }
 0x273   :  { %v5368_v52 = vadd.f32 %v5367_v43, %v5354_v49  ;;  %v5342_v53 = vadd.f32 %v5341_v48, %v5328_v12 }
 0x278   :  { %v5355_v50 = vpop.f32.mrf.mxu2 }
 0x279   :  { %v5369_v51 = vpop.f32.mrf.mxu3  ;;  %v5356_v56 = vadd.f32 %v5355_v50, %v5342_v53 }
 0x27b   :  { %v5370_v59 = vadd.f32 %v5369_v51, %v5356_v56 }
 0x288   :  { %v5381_v21 = vpop.f32.mrf.mxu0 }
 0x289   :  { %v5382_v54 = vadd.f32 %v5381_v21, %v5368_v52  ;;  %v5395_v55 = vpop.f32.mrf.mxu1 }
 0x28b   :  { %v5396_v57 = vadd.f32 %v5395_v55, %v5382_v54 }
 0x290   :  { %v5409_v24 = vpop.f32.mrf.mxu2  ;;  %v5383_v62 = vpop.f32.mrf.mxu0 }
 0x291   :  { %v5423_v58 = vpop.f32.mrf.mxu3  ;;  %v5410_v60 = vadd.f32 %v5409_v24, %v5396_v57  ;;  %v5384_v0 = vadd.f32 %v5383_v62, %v5370_v59  ;;  %v5397_v2 = vpop.f32.mrf.mxu1 }
 0x293   :  { %v5424_v63 = vadd.f32 %v5423_v58, %v5410_v60  ;;  %v5398_v3 = vadd.f32 %v5397_v2, %v5384_v0 }
 0x295   :  { %v5441_v1 = vadd.f32 %v8335_v61, %v5424_v63 }
 0x297   :  { %5443 = vst [vmem:[%s8883_s3] sm:$0xff] %v5441_v1 }
 0x298   :  { %v5411_v4 = vpop.f32.mrf.mxu2 }
 0x299   :  { %v5412_v5 = vadd.f32 %v5411_v4, %v5398_v3  ;;  %v5425_v6 = vpop.f32.mrf.mxu3 }
 0x29b   :  { %v5426_v7 = vadd.f32 %v5425_v6, %v5412_v5 }
 0x29d   :  { %v5442_v8 = vadd.f32 %v8335_v61, %v5426_v7 }
 0x29f   :  { %5444 = vst [vmem:[%s8883_s3 + $0x8] sm:$0xff] %v5442_v8 }
 0x2a0   :  { %5449 = vsyncpa [#allocation4], 1 }
 0x2a1   :  { %5450 = vsyncpa [#allocation6], 1 }

</bundles_post_ra>
